<compile_context>
chip_gen: v6e
topology: v6e:2x2x1
jax: 0.10.0
libtpu: 0.0.40
codegen_flags: <defaults>
</compile_context>

<pallas_src>
import functools

import jax
import jax.numpy as jnp
import numpy as np
from jax.experimental import pallas as pl
from jax.experimental.pallas import tpu as pltpu


# ----------------------- fused Pallas kernel -----------------------

def _fused_net_kernel(p1_ref, w1_ref, b1_ref, s2_ref, w2_ref, b2_ref,
                      wfc1_ref, bfc1_ref, wfc2_ref, bfc2_ref, out_ref, *, N):
    f32 = jnp.float32
    npos = N * 144  # conv1 pooled positions per pool-offset block

    # ---- conv1: ONE wide GEMM over all 4 pool offsets; fused 2x2 max-pool + relu ----
    # (max before bias is valid: bias is a per-channel constant)
    t = jnp.dot(w1_ref[...], p1_ref[...], preferred_element_type=f32)     # (16, 4*npos)
    c1 = jnp.maximum(jnp.maximum(t[:, 0:npos],        t[:, npos:2 * npos]),
                     jnp.maximum(t[:, 2 * npos:3 * npos], t[:, 3 * npos:4 * npos]))
    h1 = jnp.maximum(c1 + b1_ref[...], 0.0)                               # (16, N*144)
    h1b = h1.astype(jnp.bfloat16)

    # ---- conv2 im2col: batch-independent 0/1 gather (bf16, exact), one MXU pass ----
    hstack = jnp.concatenate([h1b[:, n * 144:(n + 1) * 144] for n in range(N)],
                             axis=0)                                       # (N*16, 144)
    g = jnp.dot(hstack, s2_ref[...], preferred_element_type=f32)          # (N*16, 1600)

    # restack taps onto sublanes -> single K=400 conv2 GEMM over all samples & offsets
    g_cols = []
    for n in range(N):
        g_cols.append(jnp.concatenate(
            [g[n * 16:(n + 1) * 16, k * 64:(k + 1) * 64] for k in range(25)],
            axis=0))                                                       # (400, 64)
    gk = jnp.concatenate(g_cols, axis=1)                                   # (400, N*64)
    acc = jnp.dot(w2_ref[...], gk, preferred_element_type=f32)             # (24, N*64)

    # ---- fused 2x2 max-pool + bias + relu; flatten per sample for fc1 ----
    # (conv_dropout2d is eval-mode identity)
    a_cols = []
    for n in range(N):
        base = n * 64
        p = jnp.maximum(
            jnp.maximum(acc[:, base + 0:base + 16],  acc[:, base + 16:base + 32]),
            jnp.maximum(acc[:, base + 32:base + 48], acc[:, base + 48:base + 64]))
        h2n = jnp.maximum(p + b2_ref[...], 0.0)                            # (24, 16)
        a_cols.append(jnp.concatenate([h2n[:, s:s + 1] for s in range(16)],
                                      axis=0))                             # (384, 1)
    a = jnp.concatenate(a_cols, axis=1)                                    # (384, N)

    # ---- fc1 (+relu): ONE K=384 GEMM (no permutation matmul, no 16-way split) ----
    y1 = jnp.maximum(jnp.dot(wfc1_ref[...], a, preferred_element_type=f32)
                     + bfc1_ref[...], 0.0)                                 # (50, N)

    # ---- fc2 ----
    y2 = jnp.dot(wfc2_ref[...], y1, preferred_element_type=f32) + bfc2_ref[...]  # (10, N)

    # ---- log_softmax over the class axis (sublane reductions -> XLU slot) ----
    z = y2 - jnp.max(y2, axis=0, keepdims=True)
    out_ref[...] = z - jnp.log(jnp.sum(jnp.exp(z), axis=0, keepdims=True))


# ----------------------- constant helpers -----------------------

def _build_conv2_gather():
    """Batch-independent 0/1 selection matrix S (144, 25*4*16).

    (h1_sample(16,144) @ S)[c, k*64 + dd*16 + (i*4+j)] =
        h1_sample[c, (2i+di+kh)*12 + (2j+dj+kw)]       with k=kh*5+kw, dd=di*2+dj.
    """
    S = np.zeros((144, 25 * 64), np.float32)
    for kh in range(5):
        for kw in range(5):
            k = kh * 5 + kw
            for di in range(2):
                for dj in range(2):
                    dd = di * 2 + dj
                    for i in range(4):
                        for j in range(4):
                            s = i * 4 + j
                            src = (2 * i + di + kh) * 12 + (2 * j + dj + kw)
                            S[src, k * 64 + dd * 16 + s] = 1.0
    return S


def _build_conv1_patches(x):
    """Pool-offset im2col of the input: (32, 4*N*144).

    rows = conv1 tap k=kh*5+kw (padded 25->32), cols = dd*(N*144) + n*144 + i*12 + j.
    """
    N = x.shape[0]
    xs = x[:, 0]                                                    # (N, 28, 28)
    taps = [xs[:, kh:kh + 24, kw:kw + 24] for kh in range(5) for kw in range(5)]
    pt = jnp.stack(taps, axis=0)                                    # (25, N, 24, 24)
    blocks = []
    for di in range(2):
        for dj in range(2):
            blocks.append(pt[:, :, di::2, dj::2].reshape(25, N * 144))
    p = jnp.concatenate(blocks, axis=1)                             # (25, 4*N*144)
    return jnp.pad(p, ((0, 7), (0, 0))).astype(jnp.float32)         # (32, 4*N*144)


# ----------------------- model -----------------------

def init_params(key):
    ks = jax.random.split(key, 8)

    def uni(k, shape, fan_in):
        bound = 1.0 / np.sqrt(fan_in)
        return jax.random.uniform(k, shape, jnp.float32, -bound, bound)

    return {
        "conv1_w": uni(ks[0], (10, 1, 5, 5), 1 * 5 * 5),
        "conv1_b": uni(ks[1], (10,), 1 * 5 * 5),
        "conv2_w": uni(ks[2], (20, 10, 5, 5), 10 * 5 * 5),
        "conv2_b": uni(ks[3], (20,), 10 * 5 * 5),
        "fc1_w": uni(ks[4], (50, 320), 320),   # nn.Linear stores (out, in)
        "fc1_b": uni(ks[5], (50,), 320),
        "fc2_w": uni(ks[6], (10, 50), 50),
        "fc2_b": uni(ks[7], (10,), 50),
    }


def neural_net_forward(params, x):
    """x: (N, 1, 28, 28) float32 -> (N, 10) log-probabilities."""
    N = x.shape[0]

    # --- weight / constant preprocessing (static; fused/cached by jit) ---
    w1p = jnp.pad(params["conv1_w"].reshape(10, 25), ((0, 6), (0, 7)))         # (16, 32)
    b1p = jnp.pad(params["conv1_b"], (0, 6)).reshape(16, 1)
    # conv2 weights -> lane-dense (24, 400), K index = k*16 + c
    w2flat = jnp.pad(params["conv2_w"].reshape(20, 10, 25),
                     ((0, 4), (0, 6), (0, 0))).transpose(0, 2, 1).reshape(24, 400)
    b2p = jnp.pad(params["conv2_b"], (0, 4)).reshape(24, 1)
    # fc1 weights -> lane-dense (50, 384), K index = s*24 + c  (c padded 20->24)
    wfc1p = jnp.pad(params["fc1_w"].reshape(50, 20, 16),
                    ((0, 0), (0, 4), (0, 0))).transpose(0, 2, 1).reshape(50, 384)
    bfc1c = params["fc1_b"].reshape(50, 1)
    wfc2 = params["fc2_w"]                                                      # (10, 50)
    bfc2c = params["fc2_b"].reshape(10, 1)
    # batch-independent gather matrix, 0/1 -> exact in bf16 (halves its DMA)
    s2 = jnp.asarray(_build_conv2_gather(), dtype=jnp.bfloat16)                 # (144, 1600)

    # --- per-call glue on the external input only (XLA-fused, ~147 KB at N=2) ---
    p1 = _build_conv1_patches(x)                                                # (32, 4*N*144)

    args = (p1, w1p, b1p, s2, w2flat, b2p, wfc1p, bfc1c, wfc2, bfc2c)

    def full_spec(arr):
        nd = arr.ndim
        return pl.BlockSpec(tuple(arr.shape), lambda i, _nd=nd: (0,) * _nd)

    kernel = functools.partial(_fused_net_kernel, N=N)
    out_t = pl.pallas_call(
        kernel,
        out_shape=jax.ShapeDtypeStruct((10, N), jnp.float32),
        grid=(1,),
        in_specs=[full_spec(a) for a in args],
        out_specs=pl.BlockSpec((10, N), lambda i: (0, 0)),
        compiler_params=pltpu.CompilerParams(
            dimension_semantics=("arbitrary",)),
    )(*args)

    # Tiny (80-byte) orientation fix-up: kernel runs feature-major internally.
    return out_t.T                                                              # (N, 10)


# ----------------------- pure-JAX reference (for sanity check) -----------------------

def reference_forward(params, x):
    def conv(x, w, b):
        y = jax.lax.conv_general_dilated(
            x, w, (1, 1), "VALID", dimension_numbers=("NCHW", "OIHW", "NCHW"))
        return y + b[None, :, None, None]

    def pool_relu(x):
        y = jax.lax.reduce_window(x, -jnp.inf, jax.lax.max,
                                  (1, 1, 2, 2), (1, 1, 2, 2), "VALID")
        return jnp.maximum(y, 0.0)

    x = pool_relu(conv(x, params["conv1_w"], params["conv1_b"]))
    x = pool_relu(conv(x, params["conv2_w"], params["conv2_b"]))
    x = x.reshape(x.shape[0], -1)
    x = jnp.maximum(x @ params["fc1_w"].T + params["fc1_b"], 0.0)
    x = x @ params["fc2_w"].T + params["fc2_b"]
    return jax.nn.log_softmax(x, axis=1)


if __name__ == "__main__":
    key = jax.random.PRNGKey(0)
    pkey, xkey = jax.random.split(key)
    params = init_params(pkey)

    # batch=2, channels=1, 28x28 (module default picture_size=28)
    x = jax.random.normal(xkey, (2, 1, 28, 28), dtype=jnp.float32)

    forward = jax.jit(neural_net_forward)
    out = jax.block_until_ready(forward(params, x))

    assert out.shape == (2, 10), out.shape
    assert out.dtype == jnp.float32

    ref = jax.block_until_ready(reference_forward(params, x))
    np.testing.assert_allclose(np.asarray(out), np.asarray(ref),
                               rtol=2e-2, atol=2e-2)
    # log_softmax rows should (approximately) sum to 1 in prob space
    assert np.allclose(np.exp(np.asarray(out)).sum(axis=1), 1.0, atol=1e-3)

    print("KERNEL_OK")
</pallas_src>

<mosaic_0001>
module attributes {stable_mosaic.version = 11 : i64} {
  func.func @_fused_net_kernel(%arg0: i32, %arg1: memref<32x1152xf32, #tpu.memory_space<vmem>>, %arg2: memref<16x32xf32, #tpu.memory_space<vmem>>, %arg3: memref<16x1xf32, #tpu.memory_space<vmem>>, %arg4: memref<144x1600xbf16, #tpu.memory_space<vmem>>, %arg5: memref<24x400xf32, #tpu.memory_space<vmem>>, %arg6: memref<24x1xf32, #tpu.memory_space<vmem>>, %arg7: memref<50x384xf32, #tpu.memory_space<vmem>>, %arg8: memref<50x1xf32, #tpu.memory_space<vmem>>, %arg9: memref<10x50xf32, #tpu.memory_space<vmem>>, %arg10: memref<10x1xf32, #tpu.memory_space<vmem>>, %arg11: memref<10x2xf32, #tpu.memory_space<vmem>>) attributes {dimension_semantics = [#tpu.dimension_semantics<arbitrary>], iteration_bounds = array<i64: 1>, scalar_prefetch = 0 : i64, scratch_operands = 0 : i64, tpu.core_type = #tpu.core_type<tc>, window_params = [{pipeline_mode = #tpu.pipeline_mode<synchronous>, transform_indices = @transform_0, window_bounds = array<i64: 32, 1152>}, {pipeline_mode = #tpu.pipeline_mode<synchronous>, transform_indices = @transform_1, window_bounds = array<i64: 16, 32>}, {pipeline_mode = #tpu.pipeline_mode<synchronous>, transform_indices = @transform_2, window_bounds = array<i64: 16, 1>}, {pipeline_mode = #tpu.pipeline_mode<synchronous>, transform_indices = @transform_3, window_bounds = array<i64: 144, 1600>}, {pipeline_mode = #tpu.pipeline_mode<synchronous>, transform_indices = @transform_4, window_bounds = array<i64: 24, 400>}, {pipeline_mode = #tpu.pipeline_mode<synchronous>, transform_indices = @transform_5, window_bounds = array<i64: 24, 1>}, {pipeline_mode = #tpu.pipeline_mode<synchronous>, transform_indices = @transform_6, window_bounds = array<i64: 50, 384>}, {pipeline_mode = #tpu.pipeline_mode<synchronous>, transform_indices = @transform_7, window_bounds = array<i64: 50, 1>}, {pipeline_mode = #tpu.pipeline_mode<synchronous>, transform_indices = @transform_8, window_bounds = array<i64: 10, 50>}, {pipeline_mode = #tpu.pipeline_mode<synchronous>, transform_indices = @transform_9, window_bounds = array<i64: 10, 1>}, {pipeline_mode = #tpu.pipeline_mode<synchronous>, transform_indices = @transform_10, window_bounds = array<i64: 10, 2>}]} {
    %c0 = arith.constant 0 : index
    %c0_0 = arith.constant 0 : index
    %0 = vector.load %arg2[%c0, %c0_0] : memref<16x32xf32, #tpu.memory_space<vmem>>, vector<16x32xf32>
    %c0_1 = arith.constant 0 : index
    %c0_2 = arith.constant 0 : index
    %1 = vector.load %arg1[%c0_1, %c0_2] : memref<32x1152xf32, #tpu.memory_space<vmem>>, vector<32x1152xf32>
    %cst = arith.constant dense<0.000000e+00> : vector<16x1152xf32>
    %2 = tpu.matmul %0, %1, %cst {dimension_numbers = #tpu.dot_dimension_numbers<[1], [0], [0], [1], [0, 0, 1, 1], [], []>} : vector<16x32xf32>, vector<32x1152xf32>, vector<16x1152xf32> -> vector<16x1152xf32>
    %3 = vector.extract_strided_slice %2 {offsets = [0, 0], sizes = [16, 288], strides = [1, 1]} : vector<16x1152xf32> to vector<16x288xf32>
    %4 = vector.extract_strided_slice %2 {offsets = [0, 288], sizes = [16, 288], strides = [1, 1]} : vector<16x1152xf32> to vector<16x288xf32>
    %5 = arith.maximumf %3, %4 : vector<16x288xf32>
    %6 = vector.extract_strided_slice %2 {offsets = [0, 576], sizes = [16, 288], strides = [1, 1]} : vector<16x1152xf32> to vector<16x288xf32>
    %7 = vector.extract_strided_slice %2 {offsets = [0, 864], sizes = [16, 288], strides = [1, 1]} : vector<16x1152xf32> to vector<16x288xf32>
    %8 = arith.maximumf %6, %7 : vector<16x288xf32>
    %9 = arith.maximumf %5, %8 : vector<16x288xf32>
    %c0_3 = arith.constant 0 : index
    %c0_4 = arith.constant 0 : index
    %10 = vector.load %arg3[%c0_3, %c0_4] : memref<16x1xf32, #tpu.memory_space<vmem>>, vector<16x1xf32>
    %11 = vector.broadcast %10 : vector<16x1xf32> to vector<16x288xf32>
    %12 = arith.addf %9, %11 : vector<16x288xf32>
    %cst_5 = arith.constant 0.000000e+00 : f32
    %13 = vector.broadcast %cst_5 : f32 to vector<16x288xf32>
    %14 = arith.maximumf %12, %13 : vector<16x288xf32>
    %15 = arith.truncf %14 : vector<16x288xf32> to vector<16x288xbf16>
    %16 = vector.extract_strided_slice %15 {offsets = [0, 0], sizes = [16, 144], strides = [1, 1]} : vector<16x288xbf16> to vector<16x144xbf16>
    %17 = vector.extract_strided_slice %15 {offsets = [0, 144], sizes = [16, 144], strides = [1, 1]} : vector<16x288xbf16> to vector<16x144xbf16>
    %18 = tpu.concatenate %16, %17 in 0 : vector<16x144xbf16>, vector<16x144xbf16> -> vector<32x144xbf16>
    %c0_6 = arith.constant 0 : index
    %c0_7 = arith.constant 0 : index
    %19 = vector.load %arg4[%c0_6, %c0_7] : memref<144x1600xbf16, #tpu.memory_space<vmem>>, vector<144x1600xbf16>
    %cst_8 = arith.constant dense<0.000000e+00> : vector<32x1600xf32>
    %20 = tpu.matmul %18, %19, %cst_8 {dimension_numbers = #tpu.dot_dimension_numbers<[1], [0], [0], [1], [0, 0, 1, 1], [], []>} : vector<32x144xbf16>, vector<144x1600xbf16>, vector<32x1600xf32> -> vector<32x1600xf32>
    %21 = vector.extract_strided_slice %20 {offsets = [0, 0], sizes = [16, 64], strides = [1, 1]} : vector<32x1600xf32> to vector<16x64xf32>
    %22 = vector.extract_strided_slice %20 {offsets = [0, 64], sizes = [16, 64], strides = [1, 1]} : vector<32x1600xf32> to vector<16x64xf32>
    %23 = vector.extract_strided_slice %20 {offsets = [0, 128], sizes = [16, 64], strides = [1, 1]} : vector<32x1600xf32> to vector<16x64xf32>
    %24 = vector.extract_strided_slice %20 {offsets = [0, 192], sizes = [16, 64], strides = [1, 1]} : vector<32x1600xf32> to vector<16x64xf32>
    %25 = vector.extract_strided_slice %20 {offsets = [0, 256], sizes = [16, 64], strides = [1, 1]} : vector<32x1600xf32> to vector<16x64xf32>
    %26 = vector.extract_strided_slice %20 {offsets = [0, 320], sizes = [16, 64], strides = [1, 1]} : vector<32x1600xf32> to vector<16x64xf32>
    %27 = vector.extract_strided_slice %20 {offsets = [0, 384], sizes = [16, 64], strides = [1, 1]} : vector<32x1600xf32> to vector<16x64xf32>
    %28 = vector.extract_strided_slice %20 {offsets = [0, 448], sizes = [16, 64], strides = [1, 1]} : vector<32x1600xf32> to vector<16x64xf32>
    %29 = vector.extract_strided_slice %20 {offsets = [0, 512], sizes = [16, 64], strides = [1, 1]} : vector<32x1600xf32> to vector<16x64xf32>
    %30 = vector.extract_strided_slice %20 {offsets = [0, 576], sizes = [16, 64], strides = [1, 1]} : vector<32x1600xf32> to vector<16x64xf32>
    %31 = vector.extract_strided_slice %20 {offsets = [0, 640], sizes = [16, 64], strides = [1, 1]} : vector<32x1600xf32> to vector<16x64xf32>
    %32 = vector.extract_strided_slice %20 {offsets = [0, 704], sizes = [16, 64], strides = [1, 1]} : vector<32x1600xf32> to vector<16x64xf32>
    %33 = vector.extract_strided_slice %20 {offsets = [0, 768], sizes = [16, 64], strides = [1, 1]} : vector<32x1600xf32> to vector<16x64xf32>
    %34 = vector.extract_strided_slice %20 {offsets = [0, 832], sizes = [16, 64], strides = [1, 1]} : vector<32x1600xf32> to vector<16x64xf32>
    %35 = vector.extract_strided_slice %20 {offsets = [0, 896], sizes = [16, 64], strides = [1, 1]} : vector<32x1600xf32> to vector<16x64xf32>
    %36 = vector.extract_strided_slice %20 {offsets = [0, 960], sizes = [16, 64], strides = [1, 1]} : vector<32x1600xf32> to vector<16x64xf32>
    %37 = vector.extract_strided_slice %20 {offsets = [0, 1024], sizes = [16, 64], strides = [1, 1]} : vector<32x1600xf32> to vector<16x64xf32>
    %38 = vector.extract_strided_slice %20 {offsets = [0, 1088], sizes = [16, 64], strides = [1, 1]} : vector<32x1600xf32> to vector<16x64xf32>
    %39 = vector.extract_strided_slice %20 {offsets = [0, 1152], sizes = [16, 64], strides = [1, 1]} : vector<32x1600xf32> to vector<16x64xf32>
    %40 = vector.extract_strided_slice %20 {offsets = [0, 1216], sizes = [16, 64], strides = [1, 1]} : vector<32x1600xf32> to vector<16x64xf32>
    %41 = vector.extract_strided_slice %20 {offsets = [0, 1280], sizes = [16, 64], strides = [1, 1]} : vector<32x1600xf32> to vector<16x64xf32>
    %42 = vector.extract_strided_slice %20 {offsets = [0, 1344], sizes = [16, 64], strides = [1, 1]} : vector<32x1600xf32> to vector<16x64xf32>
    %43 = vector.extract_strided_slice %20 {offsets = [0, 1408], sizes = [16, 64], strides = [1, 1]} : vector<32x1600xf32> to vector<16x64xf32>
    %44 = vector.extract_strided_slice %20 {offsets = [0, 1472], sizes = [16, 64], strides = [1, 1]} : vector<32x1600xf32> to vector<16x64xf32>
    %45 = vector.extract_strided_slice %20 {offsets = [0, 1536], sizes = [16, 64], strides = [1, 1]} : vector<32x1600xf32> to vector<16x64xf32>
    %46 = tpu.concatenate %21, %22, %23, %24, %25, %26, %27, %28, %29, %30, %31, %32, %33, %34, %35, %36 in 0 : vector<16x64xf32>, vector<16x64xf32>, vector<16x64xf32>, vector<16x64xf32>, vector<16x64xf32>, vector<16x64xf32>, vector<16x64xf32>, vector<16x64xf32>, vector<16x64xf32>, vector<16x64xf32>, vector<16x64xf32>, vector<16x64xf32>, vector<16x64xf32>, vector<16x64xf32>, vector<16x64xf32>, vector<16x64xf32> -> vector<256x64xf32>
    %47 = tpu.concatenate %37, %38, %39, %40, %41, %42, %43, %44, %45 in 0 : vector<16x64xf32>, vector<16x64xf32>, vector<16x64xf32>, vector<16x64xf32>, vector<16x64xf32>, vector<16x64xf32>, vector<16x64xf32>, vector<16x64xf32>, vector<16x64xf32> -> vector<144x64xf32>
    %48 = tpu.concatenate %46, %47 in 0 : vector<256x64xf32>, vector<144x64xf32> -> vector<400x64xf32>
    %49 = vector.extract_strided_slice %20 {offsets = [16, 0], sizes = [16, 64], strides = [1, 1]} : vector<32x1600xf32> to vector<16x64xf32>
    %50 = vector.extract_strided_slice %20 {offsets = [16, 64], sizes = [16, 64], strides = [1, 1]} : vector<32x1600xf32> to vector<16x64xf32>
    %51 = vector.extract_strided_slice %20 {offsets = [16, 128], sizes = [16, 64], strides = [1, 1]} : vector<32x1600xf32> to vector<16x64xf32>
    %52 = vector.extract_strided_slice %20 {offsets = [16, 192], sizes = [16, 64], strides = [1, 1]} : vector<32x1600xf32> to vector<16x64xf32>
    %53 = vector.extract_strided_slice %20 {offsets = [16, 256], sizes = [16, 64], strides = [1, 1]} : vector<32x1600xf32> to vector<16x64xf32>
    %54 = vector.extract_strided_slice %20 {offsets = [16, 320], sizes = [16, 64], strides = [1, 1]} : vector<32x1600xf32> to vector<16x64xf32>
    %55 = vector.extract_strided_slice %20 {offsets = [16, 384], sizes = [16, 64], strides = [1, 1]} : vector<32x1600xf32> to vector<16x64xf32>
    %56 = vector.extract_strided_slice %20 {offsets = [16, 448], sizes = [16, 64], strides = [1, 1]} : vector<32x1600xf32> to vector<16x64xf32>
    %57 = vector.extract_strided_slice %20 {offsets = [16, 512], sizes = [16, 64], strides = [1, 1]} : vector<32x1600xf32> to vector<16x64xf32>
    %58 = vector.extract_strided_slice %20 {offsets = [16, 576], sizes = [16, 64], strides = [1, 1]} : vector<32x1600xf32> to vector<16x64xf32>
    %59 = vector.extract_strided_slice %20 {offsets = [16, 640], sizes = [16, 64], strides = [1, 1]} : vector<32x1600xf32> to vector<16x64xf32>
    %60 = vector.extract_strided_slice %20 {offsets = [16, 704], sizes = [16, 64], strides = [1, 1]} : vector<32x1600xf32> to vector<16x64xf32>
    %61 = vector.extract_strided_slice %20 {offsets = [16, 768], sizes = [16, 64], strides = [1, 1]} : vector<32x1600xf32> to vector<16x64xf32>
    %62 = vector.extract_strided_slice %20 {offsets = [16, 832], sizes = [16, 64], strides = [1, 1]} : vector<32x1600xf32> to vector<16x64xf32>
    %63 = vector.extract_strided_slice %20 {offsets = [16, 896], sizes = [16, 64], strides = [1, 1]} : vector<32x1600xf32> to vector<16x64xf32>
    %64 = vector.extract_strided_slice %20 {offsets = [16, 960], sizes = [16, 64], strides = [1, 1]} : vector<32x1600xf32> to vector<16x64xf32>
    %65 = vector.extract_strided_slice %20 {offsets = [16, 1024], sizes = [16, 64], strides = [1, 1]} : vector<32x1600xf32> to vector<16x64xf32>
    %66 = vector.extract_strided_slice %20 {offsets = [16, 1088], sizes = [16, 64], strides = [1, 1]} : vector<32x1600xf32> to vector<16x64xf32>
    %67 = vector.extract_strided_slice %20 {offsets = [16, 1152], sizes = [16, 64], strides = [1, 1]} : vector<32x1600xf32> to vector<16x64xf32>
    %68 = vector.extract_strided_slice %20 {offsets = [16, 1216], sizes = [16, 64], strides = [1, 1]} : vector<32x1600xf32> to vector<16x64xf32>
    %69 = vector.extract_strided_slice %20 {offsets = [16, 1280], sizes = [16, 64], strides = [1, 1]} : vector<32x1600xf32> to vector<16x64xf32>
    %70 = vector.extract_strided_slice %20 {offsets = [16, 1344], sizes = [16, 64], strides = [1, 1]} : vector<32x1600xf32> to vector<16x64xf32>
    %71 = vector.extract_strided_slice %20 {offsets = [16, 1408], sizes = [16, 64], strides = [1, 1]} : vector<32x1600xf32> to vector<16x64xf32>
    %72 = vector.extract_strided_slice %20 {offsets = [16, 1472], sizes = [16, 64], strides = [1, 1]} : vector<32x1600xf32> to vector<16x64xf32>
    %73 = vector.extract_strided_slice %20 {offsets = [16, 1536], sizes = [16, 64], strides = [1, 1]} : vector<32x1600xf32> to vector<16x64xf32>
    %74 = tpu.concatenate %49, %50, %51, %52, %53, %54, %55, %56, %57, %58, %59, %60, %61, %62, %63, %64 in 0 : vector<16x64xf32>, vector<16x64xf32>, vector<16x64xf32>, vector<16x64xf32>, vector<16x64xf32>, vector<16x64xf32>, vector<16x64xf32>, vector<16x64xf32>, vector<16x64xf32>, vector<16x64xf32>, vector<16x64xf32>, vector<16x64xf32>, vector<16x64xf32>, vector<16x64xf32>, vector<16x64xf32>, vector<16x64xf32> -> vector<256x64xf32>
    %75 = tpu.concatenate %65, %66, %67, %68, %69, %70, %71, %72, %73 in 0 : vector<16x64xf32>, vector<16x64xf32>, vector<16x64xf32>, vector<16x64xf32>, vector<16x64xf32>, vector<16x64xf32>, vector<16x64xf32>, vector<16x64xf32>, vector<16x64xf32> -> vector<144x64xf32>
    %76 = tpu.concatenate %74, %75 in 0 : vector<256x64xf32>, vector<144x64xf32> -> vector<400x64xf32>
    %77 = tpu.concatenate %48, %76 in 1 : vector<400x64xf32>, vector<400x64xf32> -> vector<400x128xf32>
    %c0_9 = arith.constant 0 : index
    %c0_10 = arith.constant 0 : index
    %78 = vector.load %arg5[%c0_9, %c0_10] : memref<24x400xf32, #tpu.memory_space<vmem>>, vector<24x400xf32>
    %cst_11 = arith.constant dense<0.000000e+00> : vector<24x128xf32>
    %79 = tpu.matmul %78, %77, %cst_11 {dimension_numbers = #tpu.dot_dimension_numbers<[1], [0], [0], [1], [0, 0, 1, 1], [], []>} : vector<24x400xf32>, vector<400x128xf32>, vector<24x128xf32> -> vector<24x128xf32>
    %80 = vector.extract_strided_slice %79 {offsets = [0, 0], sizes = [24, 16], strides = [1, 1]} : vector<24x128xf32> to vector<24x16xf32>
    %81 = vector.extract_strided_slice %79 {offsets = [0, 16], sizes = [24, 16], strides = [1, 1]} : vector<24x128xf32> to vector<24x16xf32>
    %82 = arith.maximumf %80, %81 : vector<24x16xf32>
    %83 = vector.extract_strided_slice %79 {offsets = [0, 32], sizes = [24, 16], strides = [1, 1]} : vector<24x128xf32> to vector<24x16xf32>
    %84 = vector.extract_strided_slice %79 {offsets = [0, 48], sizes = [24, 16], strides = [1, 1]} : vector<24x128xf32> to vector<24x16xf32>
    %85 = arith.maximumf %83, %84 : vector<24x16xf32>
    %86 = arith.maximumf %82, %85 : vector<24x16xf32>
    %c0_12 = arith.constant 0 : index
    %c0_13 = arith.constant 0 : index
    %87 = vector.load %arg6[%c0_12, %c0_13] : memref<24x1xf32, #tpu.memory_space<vmem>>, vector<24x1xf32>
    %88 = vector.broadcast %87 : vector<24x1xf32> to vector<24x16xf32>
    %89 = arith.addf %86, %88 : vector<24x16xf32>
    %cst_14 = arith.constant 0.000000e+00 : f32
    %90 = vector.broadcast %cst_14 : f32 to vector<24x16xf32>
    %91 = arith.maximumf %89, %90 : vector<24x16xf32>
    %92 = vector.extract_strided_slice %91 {offsets = [0, 0], sizes = [24, 1], strides = [1, 1]} : vector<24x16xf32> to vector<24x1xf32>
    %93 = vector.extract_strided_slice %91 {offsets = [0, 1], sizes = [24, 1], strides = [1, 1]} : vector<24x16xf32> to vector<24x1xf32>
    %94 = vector.extract_strided_slice %91 {offsets = [0, 2], sizes = [24, 1], strides = [1, 1]} : vector<24x16xf32> to vector<24x1xf32>
    %95 = vector.extract_strided_slice %91 {offsets = [0, 3], sizes = [24, 1], strides = [1, 1]} : vector<24x16xf32> to vector<24x1xf32>
    %96 = vector.extract_strided_slice %91 {offsets = [0, 4], sizes = [24, 1], strides = [1, 1]} : vector<24x16xf32> to vector<24x1xf32>
    %97 = vector.extract_strided_slice %91 {offsets = [0, 5], sizes = [24, 1], strides = [1, 1]} : vector<24x16xf32> to vector<24x1xf32>
    %98 = vector.extract_strided_slice %91 {offsets = [0, 6], sizes = [24, 1], strides = [1, 1]} : vector<24x16xf32> to vector<24x1xf32>
    %99 = vector.extract_strided_slice %91 {offsets = [0, 7], sizes = [24, 1], strides = [1, 1]} : vector<24x16xf32> to vector<24x1xf32>
    %100 = vector.extract_strided_slice %91 {offsets = [0, 8], sizes = [24, 1], strides = [1, 1]} : vector<24x16xf32> to vector<24x1xf32>
    %101 = vector.extract_strided_slice %91 {offsets = [0, 9], sizes = [24, 1], strides = [1, 1]} : vector<24x16xf32> to vector<24x1xf32>
    %102 = vector.extract_strided_slice %91 {offsets = [0, 10], sizes = [24, 1], strides = [1, 1]} : vector<24x16xf32> to vector<24x1xf32>
    %103 = vector.extract_strided_slice %91 {offsets = [0, 11], sizes = [24, 1], strides = [1, 1]} : vector<24x16xf32> to vector<24x1xf32>
    %104 = vector.extract_strided_slice %91 {offsets = [0, 12], sizes = [24, 1], strides = [1, 1]} : vector<24x16xf32> to vector<24x1xf32>
    %105 = vector.extract_strided_slice %91 {offsets = [0, 13], sizes = [24, 1], strides = [1, 1]} : vector<24x16xf32> to vector<24x1xf32>
    %106 = vector.extract_strided_slice %91 {offsets = [0, 14], sizes = [24, 1], strides = [1, 1]} : vector<24x16xf32> to vector<24x1xf32>
    %107 = vector.extract_strided_slice %91 {offsets = [0, 15], sizes = [24, 1], strides = [1, 1]} : vector<24x16xf32> to vector<24x1xf32>
    %108 = tpu.concatenate %92, %93, %94, %95, %96, %97, %98, %99, %100, %101, %102, %103, %104, %105, %106, %107 in 0 : vector<24x1xf32>, vector<24x1xf32>, vector<24x1xf32>, vector<24x1xf32>, vector<24x1xf32>, vector<24x1xf32>, vector<24x1xf32>, vector<24x1xf32>, vector<24x1xf32>, vector<24x1xf32>, vector<24x1xf32>, vector<24x1xf32>, vector<24x1xf32>, vector<24x1xf32>, vector<24x1xf32>, vector<24x1xf32> -> vector<384x1xf32>
    %109 = vector.extract_strided_slice %79 {offsets = [0, 64], sizes = [24, 16], strides = [1, 1]} : vector<24x128xf32> to vector<24x16xf32>
    %110 = vector.extract_strided_slice %79 {offsets = [0, 80], sizes = [24, 16], strides = [1, 1]} : vector<24x128xf32> to vector<24x16xf32>
    %111 = arith.maximumf %109, %110 : vector<24x16xf32>
    %112 = vector.extract_strided_slice %79 {offsets = [0, 96], sizes = [24, 16], strides = [1, 1]} : vector<24x128xf32> to vector<24x16xf32>
    %113 = vector.extract_strided_slice %79 {offsets = [0, 112], sizes = [24, 16], strides = [1, 1]} : vector<24x128xf32> to vector<24x16xf32>
    %114 = arith.maximumf %112, %113 : vector<24x16xf32>
    %115 = arith.maximumf %111, %114 : vector<24x16xf32>
    %c0_15 = arith.constant 0 : index
    %c0_16 = arith.constant 0 : index
    %116 = vector.load %arg6[%c0_15, %c0_16] : memref<24x1xf32, #tpu.memory_space<vmem>>, vector<24x1xf32>
    %117 = vector.broadcast %116 : vector<24x1xf32> to vector<24x16xf32>
    %118 = arith.addf %115, %117 : vector<24x16xf32>
    %cst_17 = arith.constant 0.000000e+00 : f32
    %119 = vector.broadcast %cst_17 : f32 to vector<24x16xf32>
    %120 = arith.maximumf %118, %119 : vector<24x16xf32>
    %121 = vector.extract_strided_slice %120 {offsets = [0, 0], sizes = [24, 1], strides = [1, 1]} : vector<24x16xf32> to vector<24x1xf32>
    %122 = vector.extract_strided_slice %120 {offsets = [0, 1], sizes = [24, 1], strides = [1, 1]} : vector<24x16xf32> to vector<24x1xf32>
    %123 = vector.extract_strided_slice %120 {offsets = [0, 2], sizes = [24, 1], strides = [1, 1]} : vector<24x16xf32> to vector<24x1xf32>
    %124 = vector.extract_strided_slice %120 {offsets = [0, 3], sizes = [24, 1], strides = [1, 1]} : vector<24x16xf32> to vector<24x1xf32>
    %125 = vector.extract_strided_slice %120 {offsets = [0, 4], sizes = [24, 1], strides = [1, 1]} : vector<24x16xf32> to vector<24x1xf32>
    %126 = vector.extract_strided_slice %120 {offsets = [0, 5], sizes = [24, 1], strides = [1, 1]} : vector<24x16xf32> to vector<24x1xf32>
    %127 = vector.extract_strided_slice %120 {offsets = [0, 6], sizes = [24, 1], strides = [1, 1]} : vector<24x16xf32> to vector<24x1xf32>
    %128 = vector.extract_strided_slice %120 {offsets = [0, 7], sizes = [24, 1], strides = [1, 1]} : vector<24x16xf32> to vector<24x1xf32>
    %129 = vector.extract_strided_slice %120 {offsets = [0, 8], sizes = [24, 1], strides = [1, 1]} : vector<24x16xf32> to vector<24x1xf32>
    %130 = vector.extract_strided_slice %120 {offsets = [0, 9], sizes = [24, 1], strides = [1, 1]} : vector<24x16xf32> to vector<24x1xf32>
    %131 = vector.extract_strided_slice %120 {offsets = [0, 10], sizes = [24, 1], strides = [1, 1]} : vector<24x16xf32> to vector<24x1xf32>
    %132 = vector.extract_strided_slice %120 {offsets = [0, 11], sizes = [24, 1], strides = [1, 1]} : vector<24x16xf32> to vector<24x1xf32>
    %133 = vector.extract_strided_slice %120 {offsets = [0, 12], sizes = [24, 1], strides = [1, 1]} : vector<24x16xf32> to vector<24x1xf32>
    %134 = vector.extract_strided_slice %120 {offsets = [0, 13], sizes = [24, 1], strides = [1, 1]} : vector<24x16xf32> to vector<24x1xf32>
    %135 = vector.extract_strided_slice %120 {offsets = [0, 14], sizes = [24, 1], strides = [1, 1]} : vector<24x16xf32> to vector<24x1xf32>
    %136 = vector.extract_strided_slice %120 {offsets = [0, 15], sizes = [24, 1], strides = [1, 1]} : vector<24x16xf32> to vector<24x1xf32>
    %137 = tpu.concatenate %121, %122, %123, %124, %125, %126, %127, %128, %129, %130, %131, %132, %133, %134, %135, %136 in 0 : vector<24x1xf32>, vector<24x1xf32>, vector<24x1xf32>, vector<24x1xf32>, vector<24x1xf32>, vector<24x1xf32>, vector<24x1xf32>, vector<24x1xf32>, vector<24x1xf32>, vector<24x1xf32>, vector<24x1xf32>, vector<24x1xf32>, vector<24x1xf32>, vector<24x1xf32>, vector<24x1xf32>, vector<24x1xf32> -> vector<384x1xf32>
    %138 = tpu.concatenate %108, %137 in 1 : vector<384x1xf32>, vector<384x1xf32> -> vector<384x2xf32>
    %c0_18 = arith.constant 0 : index
    %c0_19 = arith.constant 0 : index
    %139 = vector.load %arg7[%c0_18, %c0_19] : memref<50x384xf32, #tpu.memory_space<vmem>>, vector<50x384xf32>
    %cst_20 = arith.constant dense<0.000000e+00> : vector<50x2xf32>
    %140 = tpu.matmul %139, %138, %cst_20 {dimension_numbers = #tpu.dot_dimension_numbers<[1], [0], [0], [1], [0, 0, 1, 1], [], []>} : vector<50x384xf32>, vector<384x2xf32>, vector<50x2xf32> -> vector<50x2xf32>
    %c0_21 = arith.constant 0 : index
    %c0_22 = arith.constant 0 : index
    %141 = vector.load %arg8[%c0_21, %c0_22] : memref<50x1xf32, #tpu.memory_space<vmem>>, vector<50x1xf32>
    %142 = vector.broadcast %141 : vector<50x1xf32> to vector<50x2xf32>
    %143 = arith.addf %140, %142 : vector<50x2xf32>
    %cst_23 = arith.constant 0.000000e+00 : f32
    %144 = vector.broadcast %cst_23 : f32 to vector<50x2xf32>
    %145 = arith.maximumf %143, %144 : vector<50x2xf32>
    %c0_24 = arith.constant 0 : index
    %c0_25 = arith.constant 0 : index
    %146 = vector.load %arg9[%c0_24, %c0_25] : memref<10x50xf32, #tpu.memory_space<vmem>>, vector<10x50xf32>
    %cst_26 = arith.constant dense<0.000000e+00> : vector<10x2xf32>
    %147 = tpu.matmul %146, %145, %cst_26 {dimension_numbers = #tpu.dot_dimension_numbers<[1], [0], [0], [1], [0, 0, 1, 1], [], []>} : vector<10x50xf32>, vector<50x2xf32>, vector<10x2xf32> -> vector<10x2xf32>
    %c0_27 = arith.constant 0 : index
    %c0_28 = arith.constant 0 : index
    %148 = vector.load %arg10[%c0_27, %c0_28] : memref<10x1xf32, #tpu.memory_space<vmem>>, vector<10x1xf32>
    %149 = vector.broadcast %148 : vector<10x1xf32> to vector<10x2xf32>
    %150 = arith.addf %147, %149 : vector<10x2xf32>
    %cst_29 = arith.constant dense<0xFF800000> : vector<2xf32>
    %151 = vector.multi_reduction <maximumf>, %150, %cst_29 [0] : vector<10x2xf32> to vector<2xf32>
    %152 = vector.shape_cast %151 : vector<2xf32> to vector<1x2xf32>
    %153 = vector.broadcast %152 : vector<1x2xf32> to vector<10x2xf32>
    %154 = arith.subf %150, %153 : vector<10x2xf32>
    %155 = math.exp %154 : vector<10x2xf32>
    %cst_30 = arith.constant dense<0.000000e+00> : vector<2xf32>
    %156 = vector.multi_reduction <add>, %155, %cst_30 [0] : vector<10x2xf32> to vector<2xf32>
    %157 = vector.shape_cast %156 : vector<2xf32> to vector<1x2xf32>
    %158 = math.log %157 : vector<1x2xf32>
    %159 = vector.broadcast %158 : vector<1x2xf32> to vector<10x2xf32>
    %160 = arith.subf %154, %159 : vector<10x2xf32>
    %c0_31 = arith.constant 0 : index
    %c0_32 = arith.constant 0 : index
    %161 = vector.load %arg11[%c0_31, %c0_32] : memref<10x2xf32, #tpu.memory_space<vmem>>, vector<10x2xf32>
    tpu.vector_store %arg11[%c0_31, %c0_32], %160 {strides = array<i32>} : memref<10x2xf32, #tpu.memory_space<vmem>>, vector<10x2xf32>,
    return
  }
  func.func @transform_0(%arg0: i32) -> (i32, i32) {
    %c0_i32 = arith.constant 0 : i32
    %c0_i32_0 = arith.constant 0 : i32
    %c0_i32_1 = arith.constant 0 : i32
    return %c0_i32, %c0_i32_0 : i32, i32
  }
  func.func @transform_1(%arg0: i32) -> (i32, i32) {
    %c0_i32 = arith.constant 0 : i32
    %c0_i32_0 = arith.constant 0 : i32
    %c0_i32_1 = arith.constant 0 : i32
    return %c0_i32, %c0_i32_0 : i32, i32
  }
  func.func @transform_2(%arg0: i32) -> (i32, i32) {
    %c0_i32 = arith.constant 0 : i32
    %c0_i32_0 = arith.constant 0 : i32
    %c0_i32_1 = arith.constant 0 : i32
    return %c0_i32, %c0_i32_0 : i32, i32
  }
  func.func @transform_3(%arg0: i32) -> (i32, i32) {
    %c0_i32 = arith.constant 0 : i32
    %c0_i32_0 = arith.constant 0 : i32
    %c0_i32_1 = arith.constant 0 : i32
    return %c0_i32, %c0_i32_0 : i32, i32
  }
  func.func @transform_4(%arg0: i32) -> (i32, i32) {
    %c0_i32 = arith.constant 0 : i32
    %c0_i32_0 = arith.constant 0 : i32
    %c0_i32_1 = arith.constant 0 : i32
    return %c0_i32, %c0_i32_0 : i32, i32
  }
  func.func @transform_5(%arg0: i32) -> (i32, i32) {
    %c0_i32 = arith.constant 0 : i32
    %c0_i32_0 = arith.constant 0 : i32
    %c0_i32_1 = arith.constant 0 : i32
    return %c0_i32, %c0_i32_0 : i32, i32
  }
  func.func @transform_6(%arg0: i32) -> (i32, i32) {
    %c0_i32 = arith.constant 0 : i32
    %c0_i32_0 = arith.constant 0 : i32
    %c0_i32_1 = arith.constant 0 : i32
    return %c0_i32, %c0_i32_0 : i32, i32
  }
  func.func @transform_7(%arg0: i32) -> (i32, i32) {
    %c0_i32 = arith.constant 0 : i32
    %c0_i32_0 = arith.constant 0 : i32
    %c0_i32_1 = arith.constant 0 : i32
    return %c0_i32, %c0_i32_0 : i32, i32
  }
  func.func @transform_8(%arg0: i32) -> (i32, i32) {
    %c0_i32 = arith.constant 0 : i32
    %c0_i32_0 = arith.constant 0 : i32
    %c0_i32_1 = arith.constant 0 : i32
    return %c0_i32, %c0_i32_0 : i32, i32
  }
  func.func @transform_9(%arg0: i32) -> (i32, i32) {
    %c0_i32 = arith.constant 0 : i32
    %c0_i32_0 = arith.constant 0 : i32
    %c0_i32_1 = arith.constant 0 : i32
    return %c0_i32, %c0_i32_0 : i32, i32
  }
  func.func @transform_10(%arg0: i32) -> (i32, i32) {
    %c0_i32 = arith.constant 0 : i32
    %c0_i32_0 = arith.constant 0 : i32
    %c0_i32_1 = arith.constant 0 : i32
    return %c0_i32, %c0_i32_0 : i32, i32
  }
}

</mosaic_0001>

<bundles_post_ra>
// kernel: neural_net_forward.1
= control target key start
LH: loop header
LB: loop body
LE: loop exit
PB: predicated region body
PF: predicated region fallthrough
CT: control target
= control target key end

     0   :  { %v5201_v3 = vmov 0.0   ;;  %vm74_vm0 = vcmask 261120   ;;  %v3554_v39 = vmov 0   ;;  %vm482_vm1 = vcmask 785408   ;;  %s3556_s26 = smov 64   ;;  %s3557_s21 = smov 112   ;;  %s5190_s0 = inlined_call_operand.vmem [shape: f32[32,1152], index: 0, kind: input, shape index: {}]   ;;  %s5191_s1 = inlined_call_operand.vmem [shape: f32[16,32], index: 1, kind: input, shape index: {}]   ;;  %s5192_s3 = inlined_call_operand.vmem [shape: bf16[144,1600], index: 3, kind: input, shape index: {}]   ;;  %s5193_s2 = inlined_call_operand.vmem [shape: f32[16,1], index: 2, kind: input, shape index: {}]   ;;  %s5194_s4 = inlined_call_operand.vmem [shape: f32[24,400], index: 4, kind: input, shape index: {}]   ;;  %s5195_s5 = inlined_call_operand.vmem [shape: f32[24,1], index: 5, kind: input, shape index: {}]   ;;  %s5196_s6 = inlined_call_operand.vmem [shape: f32[50,384], index: 6, kind: input, shape index: {}]   ;;  %s5197_s7 = inlined_call_operand.vmem [shape: f32[50,1], index: 7, kind: input, shape index: {}]   ;;  %s5198_s9 = inlined_call_operand.vmem [shape: f32[10,1], index: 9, kind: input, shape index: {}]   ;;  %s5199_s8 = inlined_call_operand.vmem [shape: f32[10,50], index: 8, kind: input, shape index: {}]   ;;  %s5200_s10 = inlined_call_operand.vmem [shape: f32[10,2], index: 10, kind: output, shape index: {}]  }
   0x1   :  { %v66_v0 = vld [vmem:[%s5190_s0 + $0xe0] sm:$0xff]  ;;  %v65_v1 = vld [vmem:[%s5190_s0 + $0xd8] sm:$0xff]  ;;  %145 = vmatprep.mubr.f32.mxu0 %v5201_v3  ;;  %376 = vmatprep.mubr.f32.mxu1 %v5201_v3  ;;  %v56_v4 = vld [vmem:[%s5190_s0 + $0x90] sm:$0xff]  ;;  %vm551_vm2 = vcmask 523264   ;;  %vm1324_vm3 = vcmask 130048   ;;  %vm601_vm4 = vcmask 916480  }
   0x2   :  { %v57_v2 = vld [vmem:[%s5190_s0 + $0x98] sm:$0xff]  ;;  %105 = vmatprep.subr.mxu0 %v66_v0  ;;  %v48_v5 = vld [vmem:[%s5190_s0 + $0x50] sm:$0xff]  ;;  %v47_v6 = vld [vmem:[%s5190_s0 + $0x48] sm:$0xff]  ;;  %3374 = vset.pattern.permute.xlu0 %v3554_v39  ;;  %s3560_s25 = smov 119   ;;  %s3562_s27 = smov 120   ;;  %vm2537_vm5 = vcmask 7168  }
   0x3   :  { %106 = vmatpush1.msra.mxu0 %v65_v1  ;;  %v39_v7 = vld [vmem:[%s5190_s0 + $0x8] sm:$0xff]  ;;  %v38_v8 = vld [vmem:[%s5190_s0] sm:$0xff]  ;;  %v72_v9 = vld [vmem:[%s5190_s0 + $0x110] sm:$0xff]  ;;  %3375 = vset.pattern.permute.xlu1 %v3554_v39  ;;  %s3563_s28 = smov 125   ;;  %s3564_s29 = smov 121   ;;  %vm3574_vm6 = vmmov 0  }
   0x4   :  { %107 = vmatprep.subr.mxu0 %v57_v2  ;;  %v3662_v10 = vld [vmem:[%s5191_s1] sm:$0xff]  ;;  %v68_v11 = vld [vmem:[%s5190_s0 + $0xf0] sm:$0xff]  ;;  %336 = vmatprep.subr.mxu1 %v72_v9  ;;  %v71_v12 = vld [vmem:[%s5190_s0 + $0x108] sm:$0xff]  ;;  %s3565_s30 = smov 126   ;;  %s3566_s11 = smov 122   ;;  %vm2870_vm7 = vcmask 408576  }
   0x5   :  { %108 = vmatpush1.msra.mxu0 %v56_v4  ;;  %v67_v13 = vld [vmem:[%s5190_s0 + $0xe8] sm:$0xff]  ;;  %337 = vmatpush1.msra.mxu1 %v71_v12  ;;  %v62_v16 = vld [vmem:[%s5190_s0 + $0xc0] sm:$0xff]  ;;  %v49_v21 = vld [vmem:[%s5190_s0 + $0x58] sm:$0xff]  ;;  %s3567_s12 = smov 127   ;;  %s3568_s13 = smov 114   ;;  %vm2877_vm8 = vcmask 1041408  }
   0x6   :  { %109 = vmatprep.subr.mxu0 %v48_v5  ;;  %v63_v14 = vld [vmem:[%s5190_s0 + $0xc8] sm:$0xff]  ;;  %v58_v17 = vld [vmem:[%s5190_s0 + $0xa0] sm:$0xff]  ;;  %v41_v22 = vld [vmem:[%s5190_s0 + $0x18] sm:$0xff]  ;;  %s3569_s14 = smov 113   ;;  %s3570_s15 = smov 116   ;;  %vm2958_vm9 = vcmask 9216  }
   0x7   :  { %110 = vmatpush1.msra.mxu0 %v47_v6  ;;  %v59_v15 = vld [vmem:[%s5190_s0 + $0xa8] sm:$0xff]  ;;  %338 = vmatprep.subr.mxu1 %v63_v14  ;;  %v54_v18 = vld [vmem:[%s5190_s0 + $0x80] sm:$0xff]  ;;  %v53_v23 = vld [vmem:[%s5190_s0 + $0x78] sm:$0xff]  ;;  %s3571_s16 = smov 115   ;;  %s3573_s17 = smov 65   ;;  %vm2956_vm10 = vcmask 15360  }
   0x8   :  { %111 = vmatprep.subr.mxu0 %v39_v7  ;;  %v37_v19 = vld [vmem:[%s5191_s1 + $0x8] sm:$0xff]  ;;  %v50_v20 = vld [vmem:[%s5190_s0 + $0x60] sm:$0xff]  ;;  %339 = vmatpush1.msra.mxu1 %v62_v16  ;;  %v40_v24 = vld [vmem:[%s5190_s0 + $0x10] sm:$0xff] }
   0x9   :  { %112 = vmatpush1.msra.mxu0 %v38_v8  ;;  %340 = vmatprep.subr.mxu1 %v54_v18  ;;  %v45_v25 = vld [vmem:[%s5190_s0 + $0x38] sm:$0xff]  ;;  %v70_v26 = vld [vmem:[%s5190_s0 + $0x100] sm:$0xff]  ;;  %v44_v29 = vld [vmem:[%s5190_s0 + $0x30] sm:$0xff] }
   0xa   :  { %2992 = vmatmul.mubr.msk.f32.vlgmr.msra.gmra.mxu0 %vm74_vm0, %v3662_v10  ;;  %182 = vmatprep.subr.mxu0 %v68_v11  ;;  %v69_v27 = vld [vmem:[%s5190_s0 + $0xf8] sm:$0xff]  ;;  %v60_v30 = vld [vmem:[%s5190_s0 + $0xb0] sm:$0xff]  ;;  %v51_v32 = vld [vmem:[%s5190_s0 + $0x68] sm:$0xff] }
   0xb   :  { %183 = vmatpush1.msra.mxu0 %v67_v13  ;;  %151 = vmatprep.mubr.f32.mxu0 %v5201_v3  ;;  %v61_v28 = vld [vmem:[%s5190_s0 + $0xb8] sm:$0xff]  ;;  %v52_v31 = vld [vmem:[%s5190_s0 + $0x70] sm:$0xff]  ;;  %v43_v33 = vld [vmem:[%s5190_s0 + $0x28] sm:$0xff] }
   0xc   :  { %184 = vmatprep.subr.mxu0 %v59_v15  ;;  %341 = vmatpush1.msra.mxu1 %v53_v23  ;;  %v42_v34 = vld [vmem:[%s5190_s0 + $0x20] sm:$0xff]  ;;  %v73_v35 = vld [vmem:[%s5190_s0 + $0x118] sm:$0xff]  ;;  %v64_v36 = vld [vmem:[%s5190_s0 + $0xd0] sm:$0xff] }
   0xd   :  { %185 = vmatpush1.msra.mxu0 %v58_v17  ;;  %342 = vmatprep.subr.mxu1 %v45_v25  ;;  %v55_v37 = vld [vmem:[%s5190_s0 + $0x88] sm:$0xff]  ;;  %v46_v38 = vld [vmem:[%s5190_s0 + $0x40] sm:$0xff]  ;;  %s3555_s0 = smov 96   ;;  %v3378_v59 = vld [vmem:[%s5192_s3 + $0x2dc] ss:$52 sps:$4 sm:$0xff]  }
   0xe   :  { %2993 = vmatmul.mubr.msk.f32.gmra.mxu0 %vm74_vm0, %v37_v19  ;;  %186 = vmatprep.subr.mxu0 %v50_v20  ;;  %v3376_v58 = vld [vmem:[%s5192_s3 + $0x2d8] ss:$52 sps:$4 sm:$0xff]   ;;  %v3379_v60 = vld [vmem:[%s5192_s3 + $0x2e0] ss:$52 sps:$4 sm:$0xff]   ;;  %v3382_v62 = vld [vmem:[%s5192_s3 + $0x270] ss:$52 sps:$4 sm:$0xff]  }
   0xf   :  { %187 = vmatpush1.msra.mxu0 %v49_v21  ;;  %222 = vmatprep.mubr.f32.mxu0 %v5201_v3  ;;  %v3381_v61 = vld [vmem:[%s5192_s3 + $0x2e4] ss:$52 sps:$4 sm:$0xff]   ;;  %v3384_v63 = vld [vmem:[%s5192_s3 + $0x274] ss:$52 sps:$4 sm:$0xff]   ;;  %v3387_v1 = vld [vmem:[%s5192_s3 + $0x27c] ss:$52 sps:$4 sm:$0xff]  }
  0x10   :  { %188 = vmatprep.subr.mxu0 %v41_v22  ;;  %343 = vmatpush1.msra.mxu1 %v44_v29  ;;  %v3385_v0 = vld [vmem:[%s5192_s3 + $0x278] ss:$52 sps:$4 sm:$0xff]   ;;  %v3393_v5 = vld [vmem:[%s5192_s3 + $0x214] ss:$52 sps:$4 sm:$0xff]   ;;  %v568_v6 = vld [vmem:[%s5193_s2] sm:$0xff] }
  0x11   :  { %189 = vmatpush1.msra.mxu0 %v40_v24  ;;  %2998 = vmatmul.mubr.msk.f32.vlgmr.msra.gmra.mxu1 %vm74_vm0, %v3662_v10  ;;  %v3390_v2 = vld [vmem:[%s5192_s3 + $0x20c] ss:$52 sps:$4 sm:$0xff]   ;;  %v3388_v7 = vld [vmem:[%s5192_s3 + $0x208] ss:$52 sps:$4 sm:$0xff]   ;;  %v3391_v8 = vld [vmem:[%s5192_s3 + $0x210] ss:$52 sps:$4 sm:$0xff]  }
  0x12   :  { %2994 = vmatmul.mubr.msk.f32.vlgmr.msra.gmra.mxu0 %vm74_vm0, %v3662_v10  ;;  %259 = vmatprep.subr.mxu0 %v70_v26  ;;  %v569_v4 = vld [vmem:[%s5193_s2 + $0x8] sm:$0xff]  ;;  %v3394_v9 = vld [vmem:[%s5192_s3 + $0x1a0] ss:$52 sps:$4 sm:$0xff]   ;;  %v3402_v13 = vld [vmem:[%s5192_s3 + $0x13c] ss:$52 sps:$4 sm:$0xff]   ;;  %s3572_s2 = smov 117  }
  0x13   :  { %260 = vmatpush1.msra.mxu0 %v69_v27  ;;  %228 = vmatprep.mubr.f32.mxu0 %v5201_v3  ;;  %v3399_v11 = vld [vmem:[%s5192_s3 + $0x1ac] ss:$52 sps:$4 sm:$0xff]   ;;  %v3397_v12 = vld [vmem:[%s5192_s3 + $0x1a8] ss:$52 sps:$4 sm:$0xff]   ;;  %v3405_v14 = vld [vmem:[%s5192_s3 + $0x144] ss:$52 sps:$4 sm:$0xff]  }
  0x14   :  { %261 = vmatprep.subr.mxu0 %v61_v28  ;;  %382 = vmatprep.mubr.f32.mxu1 %v5201_v3  ;;  %v3400_v15 = vld [vmem:[%s5192_s3 + $0x138] ss:$52 sps:$4 sm:$0xff]   ;;  %v3403_v16 = vld [vmem:[%s5192_s3 + $0x140] ss:$52 sps:$4 sm:$0xff]   ;;  %v3406_v20 = vld [vmem:[%s5192_s3 + $0xd0] ss:$52 sps:$4 sm:$0xff]  }
  0x15   :  { %262 = vmatpush1.msra.mxu0 %v60_v30  ;;  %2999 = vmatmul.mubr.msk.f32.gmra.mxu1 %vm74_vm0, %v37_v19  ;;  %v3408_v18 = vld [vmem:[%s5192_s3 + $0xd4] ss:$52 sps:$4 sm:$0xff]   ;;  %v3409_v21 = vld [vmem:[%s5192_s3 + $0xd8] ss:$52 sps:$4 sm:$0xff]   ;;  %v3415_v26 = vld [vmem:[%s5192_s3 + $0x70] ss:$52 sps:$4 sm:$0xff]  }
  0x16   :  { %2995 = vmatmul.mubr.msk.f32.gmra.mxu0 %vm74_vm0, %v37_v19  ;;  %263 = vmatprep.subr.mxu0 %v52_v31  ;;  %v3414_v23 = vld [vmem:[%s5192_s3 + $0x6c] ss:$52 sps:$4 sm:$0xff]   ;;  %v3417_v24 = vld [vmem:[%s5192_s3 + $0x74] ss:$52 sps:$4 sm:$0xff]  }
  0x17   :  { %264 = vmatpush1.msra.mxu0 %v51_v32  ;;  %299 = vmatprep.mubr.f32.mxu0 %v5201_v3  ;;  %v3412_v25 = vld [vmem:[%s5192_s3 + $0x68] ss:$52 sps:$4 sm:$0xff]   ;;  %v3420_v32 = vld [vmem:[%s5192_s3 + $0x4] ss:$52 sps:$4 sm:$0xff]  }
  0x18   :  { %265 = vmatprep.subr.mxu0 %v43_v33  ;;  %1331 = vmatprep.subr.bf16.mxu1 %v3378_v59  ;;  %v3423_v33 = vld [vmem:[%s5192_s3 + $0xc] ss:$52 sps:$4 sm:$0xff]  }
  0x19   :  { %266 = vmatpush1.msra.mxu0 %v42_v34  ;;  %1332 = vmatpush1.bf16.msra.mxu1 %v3376_v58  ;;  %v3435_v58 = vld [vmem:[%s5192_s3 + $0x2f4] ss:$52 sps:$4 sm:$0xff]  }
  0x1a   :  { %2996 = vmatmul.mubr.msk.f32.vlgmr.msra.gmra.mxu0 %vm74_vm0, %v3662_v10  ;;  %3271 = vmatprep.subr.mxu0 %v73_v35 }
  0x1b   :  { %3272 = vmatpush3.msra.mxu0 %v73_v35  ;;  %305 = vmatprep.mubr.f32.mxu0 %v5201_v3  ;;  %v3418_v35 = vld [vmem:[%s5192_s3] ss:$52 sps:$4 sm:$0xff]  }
  0x1c   :  { %3273 = vmatprep.subr.mxu0 %v64_v36  ;;  %1333 = vmatprep.subr.bf16.mxu1 %v3384_v63 }
  0x1d   :  { %3274 = vmatpush3.msra.mxu0 %v64_v36  ;;  %1334 = vmatpush1.bf16.msra.mxu1 %v3382_v62  ;;  %v3421_v36 = vld [vmem:[%s5192_s3 + $0x8] ss:$52 sps:$4 sm:$0xff]  }
  0x1e   :  { %2997 = vmatmul.mubr.msk.f32.gmra.mxu0 %vm74_vm0, %v37_v19  ;;  %3275 = vmatprep.subr.mxu0 %v55_v37 }
  0x1f   :  { %3276 = vmatpush3.msra.mxu0 %v55_v37  ;;  %3279 = vmatprep.mubr.msk.f32.mxu0 %vm74_vm0, %v3662_v10  ;;  %v3396_v10 = vld [vmem:[%s5192_s3 + $0x1a4] ss:$52 sps:$4 sm:$0xff]  }
  0x20   :  { %3277 = vmatprep.subr.mxu0 %v46_v38  ;;  %1335 = vmatprep.subr.bf16.mxu1 %v3390_v2 }
  0x21   :  { %3278 = vmatpush3.msra.mxu0 %v46_v38  ;;  %1336 = vmatpush1.bf16.msra.mxu1 %v3388_v7 }
  0x22   :  { %3280 = vmatmul.mubr.msk.f32.vlgmr.msra.gmra.mxu0 %vm74_vm0, %v37_v19  ;;  %1384 = vmatprep.subr.bf16.mxu0 %v3381_v61  ;;  %v3411_v19 = vld [vmem:[%s5192_s3 + $0xdc] ss:$52 sps:$4 sm:$0xff]  }
  0x23   :  { %1385 = vmatpush1.bf16.msra.mxu0 %v3379_v60  ;;  %1337 = vmatprep.subr.bf16.mxu1 %v3396_v10 }
  0x24   :  { %1386 = vmatprep.subr.bf16.mxu0 %v3387_v1 }
  0x25   :  { %1338 = vmatpush1.bf16.msra.mxu1 %v3394_v9 }
  0x26   :  { %1339 = vmatprep.subr.bf16.mxu1 %v3402_v13 }
  0x27   :  { %1387 = vmatpush1.bf16.msra.mxu0 %v3385_v0 }
  0x28   :  { %1388 = vmatprep.subr.bf16.mxu0 %v3393_v5 }
  0x29   :  { %1340 = vmatpush1.bf16.msra.mxu1 %v3400_v15 }
  0x2a   :  { %1341 = vmatprep.subr.bf16.mxu1 %v3408_v18 }
  0x2b   :  { %1389 = vmatpush1.bf16.msra.mxu0 %v3391_v8 }
  0x2c   :  { %1390 = vmatprep.subr.bf16.mxu0 %v3399_v11 }
  0x2d   :  { %1342 = vmatpush1.bf16.msra.mxu1 %v3406_v20 }
  0x2e   :  { %1343 = vmatprep.subr.bf16.mxu1 %v3414_v23 }
  0x2f   :  { %1391 = vmatpush1.bf16.msra.mxu0 %v3397_v12 }
  0x30   :  { %1392 = vmatprep.subr.bf16.mxu0 %v3405_v14 }
  0x31   :  { %1344 = vmatpush1.bf16.msra.mxu1 %v3412_v25 }
  0x32   :  { %1345 = vmatprep.subr.bf16.mxu1 %v3420_v32 }
  0x33   :  { %1393 = vmatpush1.bf16.msra.mxu0 %v3403_v16 }
  0x34   :  { %1394 = vmatprep.subr.bf16.mxu0 %v3411_v19 }
  0x35   :  { %1346 = vmatpush1.bf16.msra.mxu1 %v3418_v35 }
  0x37   :  { %1395 = vmatpush1.bf16.msra.mxu0 %v3409_v21 }
  0x38   :  { %1396 = vmatprep.subr.bf16.mxu0 %v3417_v24 }
  0x3b   :  { %1397 = vmatpush1.bf16.msra.mxu0 %v3415_v26 }
  0x3c   :  { %1398 = vmatprep.subr.bf16.mxu0 %v3423_v33 }
  0x3f   :  { %1399 = vmatpush1.bf16.msra.mxu0 %v3421_v36 }
  0xca   :  { %v3771_v40 = vpop.f32.mrf.mxu0 }
  0xcc   :  { %v3773_v41 = vpop.f32.mrf.mxu0 }
  0xce   :  { %v3775_v42 = vpop.f32.mrf.mxu0 }
  0xd0   :  { %v3777_v43 = vpop.f32.mrf.mxu0 }
  0xd1   :  { %v3781_v46 = vpop.f32.mrf.mxu1 }
  0xd2   :  { %v3779_v44 = vpop.f32.mrf.mxu0 }
  0xd3   :  { %v380_v48 = vpop.f32.mrf.mxu1 }
  0xd4   :  { %v226_v45 = vpop.f32.mrf.mxu0  ;;  %507 = vrot.lane.b32.xlu0 %v380_v48, %s3555_s0  ;;  %v3429_v48 = vld [vmem:[%s5192_s3 + $0x34c] ss:$52 sps:$4 sm:$0xff]  }
  0xd5   :  { %v3786_v50 = vpop.f32.mrf.mxu1  ;;  %1414 = vmatprep.subr.bf16.mxu0 %v3429_v48  ;;  %v3441_v48 = vld [vmem:[%s5192_s3 + $0x28c] ss:$52 sps:$4 sm:$0xff]  }
  0xd6   :  { %v3783_v47 = vpop.f32.mrf.mxu0 }
  0xd7   :  { %v386_v52 = vpop.f32.mrf.mxu1 }
  0xd8   :  { %v232_v49 = vpop.f32.mrf.mxu0  ;;  %513 = vrot.lane.b32.xlu1 %v386_v52, %s3555_s0  ;;  %v3427_v52 = vld [vmem:[%s5192_s3 + $0x348] ss:$52 sps:$4 sm:$0xff]  }
  0xd9   :  { %1415 = vmatpush2.bf16.msra.mxu0 %v3427_v52  ;;  %v3444_v52 = vld [vmem:[%s5192_s3 + $0x21c] ss:$52 sps:$4 sm:$0xff]  }
  0xda   :  { %v3788_v51 = vpop.f32.mrf.mxu0  ;;  %1490 = vmatprep.subr.bf16.mxu0 %v3435_v58  ;;  %v3453_v58 = vld [vmem:[%s5192_s3 + $0x1bc] ss:$52 sps:$4 sm:$0xff]  }
  0xdc   :  { %v3790_v53 = vpop.f32.mrf.mxu0 }
  0xde   :  { %v3793_v54 = vpop.f32.mrf.mxu0 }
  0xe0   :  { %v3795_v55 = vpop.f32.mrf.mxu0 }
  0xe2   :  { %v3281_v56 = vpop.f32.mrf.mxu0 }
  0xe3   :  { %515 = vrot.lane.b32.xlu1 %v3281_v56, %s3555_s0  ;;  %v3432_v56 = vld [vmem:[%s5192_s3 + $0x2ec] ss:$52 sps:$4 sm:$0xff]  }
  0xe4   :  { %v455_v57 = vpop.f32.mrf.mxu0 }
  0xe5   :  { %509 = vrot.lane.b32.xlu0 %v455_v57, %s3555_s0 }
  0xe7   :  { %511 = vrot.lane.b32.xlu1 %v3786_v50, %s3555_s0 }
  0xe9   :  { %505 = vrot.lane.b32.xlu0 %v3781_v46, %s3555_s0 }
  0xeb   :  { %474 = vrot.lane.b32.xlu1 %v3788_v51, %s3555_s0 }
  0xed   :  { %472 = vrot.lane.b32.xlu0 %v226_v45, %s3555_s0 }
  0xef   :  { %480 = vrot.lane.b32.xlu1 %v3793_v54, %s3555_s0 }
  0xf1   :  { %478 = vrot.lane.b32.xlu0 %v232_v49, %s3555_s0 }
  0xf3   :  { %577 = vperm.xlu1 %3375, %v569_v4  }
  0xf5   :  { %572 = vperm.xlu0 %3374, %v568_v6  }
 0x146   :  { %v508_v22 = vpop.permute.xlu0 %507 }
 0x14a   :  { %v514_v17 = vpop.permute.xlu1 %513 }
 0x155   :  { %v516_v27 = vpop.permute.xlu1 %515 }
 0x156   :  { %v520_v34 = vsel %vm482_vm1, %v514_v17, %v516_v27  ;;  %v532_v37 = vmax.f32 %v3786_v50, %v516_v27  ;;  %v3424_v50 = vld [vmem:[%s5192_s3 + $0x340] ss:$52 sps:$4 sm:$0xff]  }
 0x157   :  { %v510_v28 = vpop.permute.xlu0 %509  ;;  %v531_v38 = vmax.f32 %v3795_v55, %v520_v34 }
 0x158   :  { %v518_v29 = vsel %vm482_vm1, %v508_v22, %v510_v28  ;;  %v529_v30 = vmax.f32 %v3781_v46, %v510_v28  ;;  %v3426_v46 = vld [vmem:[%s5192_s3 + $0x344] ss:$52 sps:$4 sm:$0xff]  }
 0x159   :  { %v528_v31 = vmax.f32 %v3790_v53, %v518_v29  ;;  %v512_v45 = vpop.permute.xlu1 %511  ;;  %1361 = vmatprep.subr.bf16.mxu1 %v3426_v46  ;;  %v3438_v46 = vld [vmem:[%s5192_s3 + $0x284] ss:$52 sps:$4 sm:$0xff]  }
 0x15a   :  { %543 = vrot.lane.b32.xlu0 %v529_v30, %s3556_s26  ;;  %v519_v53 = vsel %vm482_vm1, %v512_v45, %v514_v17  ;;  %1362 = vmatpush2.bf16.msra.mxu1 %v3424_v50  ;;  %v3439_v50 = vld [vmem:[%s5192_s3 + $0x288] ss:$52 sps:$4 sm:$0xff]  }
 0x15b   :  { %541 = vrot.lane.b32.xlu1 %v528_v31, %s3556_s26  ;;  %v506_v49 = vpop.permute.xlu0 %505  ;;  %v530_v57 = vmax.f32 %v3793_v54, %v519_v53  ;;  %1437 = vmatprep.subr.bf16.mxu1 %v3432_v56  ;;  %v3447_v53 = vld [vmem:[%s5192_s3 + $0x224] ss:$52 sps:$4 sm:$0xff]   ;;  %v3445_v56 = vld [vmem:[%s5192_s3 + $0x220] ss:$52 sps:$4 sm:$0xff]  }
 0x15c   :  { %v517_v55 = vsel %vm482_vm1, %v506_v49, %v508_v22  ;;  %v3436_v49 = vld [vmem:[%s5192_s3 + $0x280] ss:$52 sps:$4 sm:$0xff]  }
 0x15d   :  { %v527_v59 = vmax.f32 %v3788_v51, %v517_v55  ;;  %v475_v61 = vpop.permute.xlu1 %474  ;;  %v3442_v55 = vld [vmem:[%s5192_s3 + $0x218] ss:$52 sps:$4 sm:$0xff]  }
 0x15e   :  { %549 = vrot.lane.b32.xlu0 %v532_v37, %s3556_s26  ;;  %v495_v2 = vmax.f32 %v3779_v44, %v475_v61  ;;  %v3430_v37 = vld [vmem:[%s5192_s3 + $0x2e8] ss:$52 sps:$4 sm:$0xff]  }
 0x15f   :  { %547 = vrot.lane.b32.xlu1 %v531_v38, %s3556_s26  ;;  %v473_v60 = vpop.permute.xlu0 %472  ;;  %v3433_v38 = vld [vmem:[%s5192_s3 + $0x2f0] ss:$52 sps:$4 sm:$0xff]  }
 0x160   :  { %v484_v54 = vsel %vm482_vm1, %v473_v60, %v475_v61  ;;  %v3456_v61 = vld [vmem:[%s5192_s3 + $0x14c] ss:$52 sps:$4 sm:$0xff]  }
 0x161   :  { %v481_v63 = vpop.permute.xlu1 %480  ;;  %v494_v51 = vmax.f32 %v3773_v41, %v484_v54  ;;  %v3465_v54 = vld [vmem:[%s5192_s3 + $0xec] ss:$52 sps:$4 sm:$0xff]  }
 0x162   :  { %476 = vrot.lane.b32.xlu0 %v3783_v47, %s3555_s0  ;;  %v498_v9 = vmax.f32 %v3783_v47, %v481_v63 }
 0x163   :  { %470 = vrot.lane.b32.xlu1 %v3779_v44, %s3555_s0  ;;  %v479_v62 = vpop.permute.xlu0 %478 }
 0x164   :  { %v486_v7 = vsel %vm482_vm1, %v479_v62, %v481_v63  ;;  %v3454_v63 = vld [vmem:[%s5192_s3 + $0x148] ss:$52 sps:$4 sm:$0xff]  }
 0x165   :  { %v497_v12 = vmax.f32 %v3777_v43, %v486_v7  ;;  %v3469_v7 = vld [vmem:[%s5192_s3 + $0x80] ss:$52 sps:$4 sm:$0xff]  }
 0x166   :  { %545 = vrot.lane.b32.xlu0 %v530_v57, %s3556_s26  ;;  %v3450_v57 = vld [vmem:[%s5192_s3 + $0x1b4] ss:$52 sps:$4 sm:$0xff]  }
 0x167   :  { %539 = vrot.lane.b32.xlu1 %v527_v59, %s3556_s26  ;;  %v3448_v59 = vld [vmem:[%s5192_s3 + $0x1b0] ss:$52 sps:$4 sm:$0xff]  }
 0x16e   :  { %v578_v1 = vpop.permute.xlu1 %577 }
 0x170   :  { %v573_v0 = vpop.permute.xlu0 %572 }
 0x1cc   :  { %v544_v4 = vpop.permute.xlu0 %543 }
 0x1cd   :  { %v564_v5 = vmax.f32 %v495_v2, %v544_v4  ;;  %v542_v6 = vpop.permute.xlu1 %541  ;;  %v3460_v2 = vld [vmem:[%s5192_s3 + $0xe0] ss:$52 sps:$4 sm:$0xff]  }
 0x1ce   :  { %v553_v8 = vsel %vm551_vm2, %v542_v6, %v544_v4  ;;  %v3463_v4 = vld [vmem:[%s5192_s3 + $0xe8] ss:$52 sps:$4 sm:$0xff]  }
 0x1cf   :  { %v563_v10 = vmax.f32 %v494_v51, %v553_v8  ;;  %v582_v13 = vadd.f32 %v573_v0, %v564_v5  ;;  %v3468_v51 = vld [vmem:[%s5192_s3 + $0x7c] ss:$52 sps:$4 sm:$0xff]   ;;  %v3471_v5 = vld [vmem:[%s5192_s3 + $0x84] ss:$52 sps:$4 sm:$0xff]   ;;  %v3474_v8 = vld [vmem:[%s5192_s3 + $0x14] ss:$52 sps:$4 sm:$0xff]  }
 0x1d0   :  { %v550_v11 = vpop.permute.xlu0 %549 }
 0x1d1   :  { %v567_v14 = vmax.f32 %v498_v9, %v550_v11  ;;  %v548_v15 = vpop.permute.xlu1 %547  ;;  %v581_v16 = vadd.f32 %v573_v0, %v563_v10  ;;  %v588_v22 = vmax.f32 %v582_v13, 0.0  ;;  %v3477_v9 = vld [vmem:[%s5192_s3 + $0x1c] ss:$52 sps:$4 sm:$0xff]  }
 0x1d2   :  { %v555_v44 = vsel %vm551_vm2, %v548_v15, %v550_v11  ;;  %v3472_v10 = vld [vmem:[%s5192_s3 + $0x10] ss:$52 sps:$4 sm:$0xff]   ;;  %v3475_v11 = vld [vmem:[%s5192_s3 + $0x18] ss:$52 sps:$4 sm:$0xff]  }
 0x1d3   :  { %v585_v17 = vadd.f32 %v578_v1, %v567_v14  ;;  %v566_v41 = vmax.f32 %v497_v12, %v555_v44  ;;  %v587_v24 = vmax.f32 %v581_v16, 0.0  ;;  %v3480_v12 = vld [vmem:[%s5192_s3 + $0x354] ss:$52 sps:$4 sm:$0xff]   ;;  %v3483_v13 = vld [vmem:[%s5192_s3 + $0x35c] ss:$52 sps:$4 sm:$0xff]  }
 0x1d4   :  { %v477_v18 = vpop.permute.xlu0 %476  ;;  %v3478_v14 = vld [vmem:[%s5192_s3 + $0x350] ss:$52 sps:$4 sm:$0xff]  }
 0x1d5   :  { %v584_v19 = vadd.f32 %v578_v1, %v566_v41  ;;  %v485_v20 = vsel %vm482_vm1, %v477_v18, %v479_v62  ;;  %v471_v21 = vpop.permute.xlu1 %470  ;;  %v591_v23 = vmax.f32 %v585_v17, 0.0  ;;  %v3459_v62 = vld [vmem:[%s5192_s3 + $0x154] ss:$52 sps:$4 sm:$0xff]   ;;  %v3486_v44 = vld [vmem:[%s5192_s3 + $0x2fc] ss:$52 sps:$4 sm:$0xff]  }
 0x1d6   :  { %v483_v47 = vsel %vm482_vm1, %v471_v21, %v473_v60  ;;  %v496_v26 = vmax.f32 %v3775_v42, %v485_v20  ;;  %v3451_v60 = vld [vmem:[%s5192_s3 + $0x1b8] ss:$52 sps:$4 sm:$0xff]   ;;  %v3487_v20 = vld [vmem:[%s5192_s3 + $0x300] ss:$52 sps:$4 sm:$0xff]  }
 0x1d7   :  { %v590_v25 = vmax.f32 %v584_v19, 0.0  ;;  %v594_v43 = vpack.c.bf16 %v591_v23, %v588_v22  ;;  %v493_v29 = vmax.f32 %v3771_v40, %v483_v47  ;;  %v3489_v16 = vld [vmem:[%s5192_s3 + $0x304] ss:$52 sps:$4 sm:$0xff]   ;;  %v3492_v21 = vld [vmem:[%s5192_s3 + $0x294] ss:$52 sps:$4 sm:$0xff]  }
 0x1d8   :  { %v546_v27 = vpop.permute.xlu0 %545  ;;  %v3484_v19 = vld [vmem:[%s5192_s3 + $0x2f8] ss:$52 sps:$4 sm:$0xff]   ;;  %v3495_v22 = vld [vmem:[%s5192_s3 + $0x29c] ss:$52 sps:$4 sm:$0xff]  }
 0x1d9   :  { %v3960_v28 = vpack.c.bf16 %v590_v25, %v587_v24  ;;  %v554_v30 = vsel %vm551_vm2, %v546_v27, %v548_v15  ;;  %v540_v31 = vpop.permute.xlu1 %539  ;;  %599 = vrot.lane.b32.xlu0 %v594_v43, %s3557_s21  ;;  %v3481_v15 = vld [vmem:[%s5192_s3 + $0x358] ss:$52 sps:$4 sm:$0xff]   ;;  %v3490_v23 = vld [vmem:[%s5192_s3 + $0x290] ss:$52 sps:$4 sm:$0xff]   ;;  %v3501_v25 = vld [vmem:[%s5192_s3 + $0x234] ss:$52 sps:$4 sm:$0xff]  }
 0x1da   :  { %v565_v32 = vmax.f32 %v496_v26, %v554_v30  ;;  %v552_v33 = vsel %vm551_vm2, %v540_v31, %v542_v6  ;;  %v3466_v6 = vld [vmem:[%s5192_s3 + $0x78] ss:$52 sps:$4 sm:$0xff]   ;;  %v3496_v43 = vld [vmem:[%s5192_s3 + $0x228] ss:$52 sps:$4 sm:$0xff]   ;;  %v3499_v26 = vld [vmem:[%s5192_s3 + $0x230] ss:$52 sps:$4 sm:$0xff]  }
 0x1db   :  { %v562_v34 = vmax.f32 %v493_v29, %v552_v33  ;;  %597 = vrot.lane.b32.xlu1 %v3960_v28, %s3557_s21  ;;  %3119 = vmatprep.mubr.msk.bf16.mxu1 %vm1324_vm3, %v3960_v28  ;;  %v3493_v47 = vld [vmem:[%s5192_s3 + $0x298] ss:$52 sps:$4 sm:$0xff]   ;;  %v3502_v30 = vld [vmem:[%s5192_s3 + $0x1c0] ss:$52 sps:$4 sm:$0xff]   ;;  %v3505_v31 = vld [vmem:[%s5192_s3 + $0x1c8] ss:$52 sps:$4 sm:$0xff]  }
 0x1dc   :  { %v583_v42 = vadd.f32 %v578_v1, %v565_v32  ;;  %3121 = vmatprep.mubr.msk.bf16.mxu0 %vm1324_vm3, %v3960_v28  ;;  %v3462_v1 = vld [vmem:[%s5192_s3 + $0xe4] ss:$52 sps:$4 sm:$0xff]   ;;  %v3498_v24 = vld [vmem:[%s5192_s3 + $0x22c] ss:$52 sps:$4 sm:$0xff]   ;;  %v3510_v32 = vld [vmem:[%s5192_s3 + $0x15c] ss:$52 sps:$4 sm:$0xff]  }
 0x1dd   :  { %v580_v40 = vadd.f32 %v573_v0, %v562_v34  ;;  %v3457_v0 = vld [vmem:[%s5192_s3 + $0x150] ss:$52 sps:$4 sm:$0xff]   ;;  %v3507_v29 = vld [vmem:[%s5192_s3 + $0x1cc] ss:$52 sps:$4 sm:$0xff]  }
 0x1de   :  { %v589_v35 = vmax.f32 %v583_v42, 0.0  ;;  %v3504_v27 = vld [vmem:[%s5192_s3 + $0x1c4] ss:$52 sps:$4 sm:$0xff]   ;;  %v3511_v42 = vld [vmem:[%s5192_s3 + $0x160] ss:$52 sps:$4 sm:$0xff]  }
 0x1df   :  { %v586_v36 = vmax.f32 %v580_v40, 0.0  ;;  %v3513_v33 = vld [vmem:[%s5192_s3 + $0x164] ss:$52 sps:$4 sm:$0xff]   ;;  %v3516_v40 = vld [vmem:[%s5192_s3 + $0xf4] ss:$52 sps:$4 sm:$0xff]  }
 0x1e0   :  { %v3508_v34 = vld [vmem:[%s5192_s3 + $0x158] ss:$52 sps:$4 sm:$0xff]  }
 0x1e1   :  { %v3978_v45 = vpack.c.bf16 %v589_v35, %v586_v36  ;;  %v3519_v35 = vld [vmem:[%s5192_s3 + $0xfc] ss:$52 sps:$4 sm:$0xff]  }
 0x1e2   :  { %v3514_v36 = vld [vmem:[%s5192_s3 + $0xf0] ss:$52 sps:$4 sm:$0xff]  }
 0x1e3   :  { %1364 = vmatmul.mubr.bf16.vlgmr.msra.gmra.mxu1 %v3978_v45  ;;  %1417 = vmatmul.mubr.bf16.vlgmr.msra.gmra.mxu0 %v3978_v45 }
 0x1e4   :  { %1438 = vmatpush1.bf16.msra.mxu1 %v3430_v37  ;;  %1491 = vmatpush1.bf16.msra.mxu0 %v3433_v38  ;;  %v3517_v37 = vld [vmem:[%s5192_s3 + $0xf8] ss:$52 sps:$4 sm:$0xff]  }
 0x1e5   :  { %1439 = vmatprep.subr.bf16.mxu1 %v3438_v46  ;;  %1492 = vmatprep.subr.bf16.mxu0 %v3441_v48  ;;  %v3522_v38 = vld [vmem:[%s5192_s3 + $0x8c] ss:$52 sps:$4 sm:$0xff]   ;;  %v3525_v46 = vld [vmem:[%s5192_s3 + $0x94] ss:$52 sps:$4 sm:$0xff]  }
 0x1e6   :  { %v3520_v48 = vld [vmem:[%s5192_s3 + $0x88] ss:$52 sps:$4 sm:$0xff]  }
 0x1e8   :  { %1440 = vmatpush1.bf16.msra.mxu1 %v3436_v49  ;;  %1493 = vmatpush1.bf16.msra.mxu0 %v3439_v50  ;;  %v3523_v49 = vld [vmem:[%s5192_s3 + $0x90] ss:$52 sps:$4 sm:$0xff]  }
 0x1e9   :  { %1441 = vmatprep.subr.bf16.mxu1 %v3444_v52  ;;  %1494 = vmatprep.subr.bf16.mxu0 %v3447_v53  ;;  %v3528_v50 = vld [vmem:[%s5192_s3 + $0x24] ss:$52 sps:$4 sm:$0xff]   ;;  %v3531_v52 = vld [vmem:[%s5192_s3 + $0x2c] ss:$52 sps:$4 sm:$0xff]  }
 0x1ea   :  { %v3526_v53 = vld [vmem:[%s5192_s3 + $0x20] ss:$52 sps:$4 sm:$0xff]  }
 0x1ec   :  { %1442 = vmatpush1.bf16.msra.mxu1 %v3442_v55  ;;  %1495 = vmatpush1.bf16.msra.mxu0 %v3445_v56  ;;  %v3529_v55 = vld [vmem:[%s5192_s3 + $0x28] ss:$52 sps:$4 sm:$0xff]   ;;  %v3534_v56 = vld [vmem:[%s5192_s3 + $0x364] ss:$52 sps:$4 sm:$0xff]  }
 0x1ed   :  { %1443 = vmatprep.subr.bf16.mxu1 %v3450_v57  ;;  %1496 = vmatprep.subr.bf16.mxu0 %v3453_v58  ;;  %v3537_v57 = vld [vmem:[%s5192_s3 + $0x36c] ss:$52 sps:$4 sm:$0xff]  }
 0x1ee   :  { %v3532_v58 = vld [vmem:[%s5192_s3 + $0x360] ss:$52 sps:$4 sm:$0xff]  }
 0x1f0   :  { %1444 = vmatpush1.bf16.msra.mxu1 %v3448_v59  ;;  %1497 = vmatpush1.bf16.msra.mxu0 %v3451_v60  ;;  %v3535_v59 = vld [vmem:[%s5192_s3 + $0x368] ss:$52 sps:$4 sm:$0xff]  }
 0x1f1   :  { %1445 = vmatprep.subr.bf16.mxu1 %v3456_v61  ;;  %1498 = vmatprep.subr.bf16.mxu0 %v3459_v62  ;;  %v3538_v60 = vld [vmem:[%s5192_s3 + $0x308] ss:$52 sps:$4 sm:$0xff]   ;;  %v3539_v61 = vld [vmem:[%s5192_s3 + $0x2a0] ss:$52 sps:$4 sm:$0xff]   ;;  %v3540_v62 = vld [vmem:[%s5192_s3 + $0x238] ss:$52 sps:$4 sm:$0xff]  }
 0x1f4   :  { %1446 = vmatpush1.bf16.msra.mxu1 %v3454_v63  ;;  %1499 = vmatpush1.bf16.msra.mxu0 %v3457_v0  ;;  %v3541_v63 = vld [vmem:[%s5192_s3 + $0x1d0] ss:$52 sps:$4 sm:$0xff]   ;;  %v3542_v0 = vld [vmem:[%s5192_s3 + $0x168] ss:$52 sps:$4 sm:$0xff]  }
 0x1f5   :  { %1447 = vmatprep.subr.bf16.mxu1 %v3462_v1  ;;  %1500 = vmatprep.subr.bf16.mxu0 %v3465_v54  ;;  %v3543_v1 = vld [vmem:[%s5192_s3 + $0x100] ss:$52 sps:$4 sm:$0xff]   ;;  %v3545_v54 = vld [vmem:[%s5192_s3 + $0x30] ss:$52 sps:$4 sm:$0xff]  }
 0x1f8   :  { %1448 = vmatpush1.bf16.msra.mxu1 %v3460_v2  ;;  %1501 = vmatpush1.bf16.msra.mxu0 %v3463_v4  ;;  %v3546_v2 = vld [vmem:[%s5192_s3 + $0x370] ss:$52 sps:$4 sm:$0xff]  }
 0x1f9   :  { %1449 = vmatprep.subr.bf16.mxu1 %v3468_v51  ;;  %1502 = vmatprep.subr.bf16.mxu0 %v3471_v5 }
 0x1fc   :  { %1450 = vmatpush1.bf16.msra.mxu1 %v3466_v6  ;;  %1503 = vmatpush1.bf16.msra.mxu0 %v3469_v7 }
 0x1fd   :  { %1451 = vmatprep.subr.bf16.mxu1 %v3474_v8  ;;  %1504 = vmatprep.subr.bf16.mxu0 %v3477_v9 }
 0x200   :  { %1452 = vmatpush1.bf16.msra.mxu1 %v3472_v10  ;;  %1505 = vmatpush1.bf16.msra.mxu0 %v3475_v11 }
 0x201   :  { %1467 = vmatprep.subr.bf16.mxu1 %v3480_v12  ;;  %1520 = vmatprep.subr.bf16.mxu0 %v3483_v13 }
 0x204   :  { %1468 = vmatpush2.bf16.msra.mxu1 %v3478_v14  ;;  %1521 = vmatpush2.bf16.msra.mxu0 %v3481_v15 }
 0x205   :  { %1543 = vmatprep.subr.bf16.mxu1 %v3486_v44  ;;  %1596 = vmatprep.subr.bf16.mxu0 %v3489_v16 }
 0x24b   :  { %v4084_v17 = vpop.permute.xlu0 %599 }
 0x24c   :  { %3120 = vmatprep.mubr.msk.bf16.mxu1 %vm1324_vm3, %v4084_v17  ;;  %3122 = vmatprep.mubr.msk.bf16.mxu0 %vm1324_vm3, %v4084_v17 }
 0x24d   :  { %v598_v41 = vpop.permute.xlu1 %597 }
 0x24e   :  { %v4091_v18 = vsel %vm601_vm4, %v598_v41, %v4084_v17 }
 0x24f   :  { %1374 = vmatmul.mubr.bf16.gmra.mxu1 %v4091_v18  ;;  %1427 = vmatmul.mubr.bf16.gmra.mxu0 %v4091_v18 }
 0x250   :  { %3123 = vmatprep.mubr.msk.bf16.mxu1 %vm1324_vm3, %v3960_v28  ;;  %3125 = vmatprep.mubr.msk.bf16.mxu0 %vm1324_vm3, %v3960_v28 }
 0x257   :  { %1470 = vmatmul.mubr.bf16.vlgmr.msra.gmra.mxu1 %v3978_v45  ;;  %1523 = vmatmul.mubr.bf16.vlgmr.msra.gmra.mxu0 %v3978_v45 }
 0x258   :  { %1544 = vmatpush1.bf16.msra.mxu1 %v3484_v19  ;;  %1597 = vmatpush1.bf16.msra.mxu0 %v3487_v20 }
 0x259   :  { %3124 = vmatprep.mubr.msk.bf16.mxu1 %vm1324_vm3, %v4084_v17  ;;  %3126 = vmatprep.mubr.msk.bf16.mxu0 %vm1324_vm3, %v4084_v17 }
 0x25a   :  { %1545 = vmatprep.subr.bf16.mxu1 %v3492_v21  ;;  %1598 = vmatprep.subr.bf16.mxu0 %v3495_v22 }
 0x25c   :  { %1546 = vmatpush1.bf16.msra.mxu1 %v3490_v23  ;;  %1599 = vmatpush1.bf16.msra.mxu0 %v3493_v47 }
 0x25d   :  { %1547 = vmatprep.subr.bf16.mxu1 %v3498_v24  ;;  %1600 = vmatprep.subr.bf16.mxu0 %v3501_v25 }
 0x25f   :  { %1480 = vmatmul.mubr.bf16.gmra.mxu1 %v4091_v18  ;;  %1533 = vmatmul.mubr.bf16.gmra.mxu0 %v4091_v18 }
 0x260   :  { %1548 = vmatpush1.bf16.msra.mxu1 %v3496_v43  ;;  %1601 = vmatpush1.bf16.msra.mxu0 %v3499_v26 }
 0x261   :  { %3127 = vmatprep.mubr.msk.bf16.mxu1 %vm1324_vm3, %v3960_v28  ;;  %3129 = vmatprep.mubr.msk.bf16.mxu0 %vm1324_vm3, %v3960_v28 }
 0x262   :  { %1549 = vmatprep.subr.bf16.mxu1 %v3504_v27  ;;  %1602 = vmatprep.subr.bf16.mxu0 %v3507_v29 }
 0x264   :  { %1550 = vmatpush1.bf16.msra.mxu1 %v3502_v30  ;;  %1603 = vmatpush1.bf16.msra.mxu0 %v3505_v31 }
 0x265   :  { %1551 = vmatprep.subr.bf16.mxu1 %v3510_v32  ;;  %1604 = vmatprep.subr.bf16.mxu0 %v3513_v33 }
 0x268   :  { %1552 = vmatpush1.bf16.msra.mxu1 %v3508_v34  ;;  %1605 = vmatpush1.bf16.msra.mxu0 %v3511_v42 }
 0x269   :  { %1553 = vmatprep.subr.bf16.mxu1 %v3516_v40  ;;  %1606 = vmatprep.subr.bf16.mxu0 %v3519_v35 }
 0x26c   :  { %1554 = vmatpush1.bf16.msra.mxu1 %v3514_v36  ;;  %1607 = vmatpush1.bf16.msra.mxu0 %v3517_v37 }
 0x26d   :  { %1555 = vmatprep.subr.bf16.mxu1 %v3522_v38  ;;  %1608 = vmatprep.subr.bf16.mxu0 %v3525_v46 }
 0x270   :  { %1556 = vmatpush1.bf16.msra.mxu1 %v3520_v48  ;;  %1609 = vmatpush1.bf16.msra.mxu0 %v3523_v49 }
 0x271   :  { %1557 = vmatprep.subr.bf16.mxu1 %v3528_v50  ;;  %1610 = vmatprep.subr.bf16.mxu0 %v3531_v52 }
 0x274   :  { %1558 = vmatpush1.bf16.msra.mxu1 %v3526_v53  ;;  %1611 = vmatpush1.bf16.msra.mxu0 %v3529_v55 }
 0x275   :  { %1573 = vmatprep.subr.bf16.mxu1 %v3534_v56  ;;  %1626 = vmatprep.subr.bf16.mxu0 %v3537_v57 }
 0x278   :  { %1574 = vmatpush2.bf16.msra.mxu1 %v3532_v58  ;;  %1627 = vmatpush2.bf16.msra.mxu0 %v3535_v59 }
 0x279   :  { %1649 = vmatprep.subr.bf16.mxu1 %v3554_v39 }
 0x27b   :  { %1576 = vmatmul.mubr.bf16.vlgmr.msra.gmra.mxu1 %v3978_v45  ;;  %1629 = vmatmul.mubr.bf16.vlgmr.msra.gmra.mxu0 %v3978_v45 }
 0x27c   :  { %3128 = vmatprep.mubr.msk.bf16.mxu1 %vm1324_vm3, %v4084_v17  ;;  %3130 = vmatprep.mubr.msk.bf16.mxu0 %vm1324_vm3, %v4084_v17 }
 0x27d   :  { %1650 = vmatpush1.bf16.msra.mxu1 %v3538_v60 }
 0x27e   :  { %1651 = vmatprep.subr.bf16.mxu1 %v3554_v39 }
 0x281   :  { %1652 = vmatpush1.bf16.msra.mxu1 %v3539_v61 }
 0x282   :  { %1653 = vmatprep.subr.bf16.mxu1 %v3554_v39 }
 0x283   :  { %1586 = vmatmul.mubr.bf16.gmra.mxu1 %v4091_v18  ;;  %1639 = vmatmul.mubr.bf16.gmra.mxu0 %v4091_v18 }
 0x284   :  { %3131 = vmatprep.mubr.msk.bf16.mxu1 %vm1324_vm3, %v3960_v28  ;;  %v3544_v28 = vld [vmem:[%s5192_s3 + $0x98] ss:$52 sps:$4 sm:$0xff]  }
 0x285   :  { %1654 = vmatpush1.bf16.msra.mxu1 %v3540_v62 }
 0x286   :  { %1655 = vmatprep.subr.bf16.mxu1 %v3554_v39 }
 0x289   :  { %1656 = vmatpush1.bf16.msra.mxu1 %v3541_v63 }
 0x28a   :  { %1657 = vmatprep.subr.bf16.mxu1 %v3554_v39 }
 0x28d   :  { %1658 = vmatpush1.bf16.msra.mxu1 %v3542_v0 }
 0x28e   :  { %1659 = vmatprep.subr.bf16.mxu1 %v3554_v39 }
 0x291   :  { %1660 = vmatpush1.bf16.msra.mxu1 %v3543_v1 }
 0x292   :  { %1661 = vmatprep.subr.bf16.mxu1 %v3554_v39 }
 0x295   :  { %1662 = vmatpush1.bf16.msra.mxu1 %v3544_v28 }
 0x296   :  { %1663 = vmatprep.subr.bf16.mxu1 %v3554_v39 }
 0x299   :  { %1664 = vmatpush1.bf16.msra.mxu1 %v3545_v54 }
 0x29a   :  { %1679 = vmatprep.subr.bf16.mxu1 %v3554_v39 }
 0x29d   :  { %1680 = vmatpush2.bf16.msra.mxu1 %v3546_v2 }
 0x2a0   :  { %1682 = vmatmul.mubr.bf16.vlgmr.msra.gmra.mxu1 %v3978_v45 }
 0x2a1   :  { %3132 = vmatprep.mubr.msk.bf16.mxu1 %vm1324_vm3, %v4084_v17 }
 0x2a3   :  { %v4263_v4 = vpop.f32.mrf.mxu1  ;;  %v4265_v51 = vpop.f32.mrf.mxu0 }
 0x2a5   :  { %v4267_v5 = vpop.f32.mrf.mxu1  ;;  %v4269_v6 = vpop.f32.mrf.mxu0 }
 0x2a7   :  { %v4271_v7 = vpop.f32.mrf.mxu1  ;;  %v4273_v8 = vpop.f32.mrf.mxu0 }
 0x2a8   :  { %1690 = vmatmul.mubr.bf16.gmra.mxu1 %v4091_v18 }
 0x2a9   :  { %v4275_v39 = vpop.f32.mrf.mxu1  ;;  %v4277_v45 = vpop.f32.mrf.mxu0 }
 0x30f   :  { %v1375_v9 = vpop.f32.mrf.mxu1  ;;  %v1428_v10 = vpop.f32.mrf.mxu0 }
 0x310   :  { %1808 = vrot.lane.b32.xlu0 %v1428_v10, %s3556_s26 }
 0x311   :  { %v1377_v11 = vpop.f32.mrf.mxu1  ;;  %v1430_v12 = vpop.f32.mrf.mxu0 }
 0x313   :  { %v1379_v13 = vpop.f32.mrf.mxu1  ;;  %v1432_v14 = vpop.f32.mrf.mxu0 }
 0x314   :  { %1814 = vrot.lane.b32.xlu0 %v1430_v12, %s3556_s26 }
 0x315   :  { %v1381_v15 = vpop.f32.mrf.mxu1  ;;  %v1434_v44 = vpop.f32.mrf.mxu0 }
 0x317   :  { %v4281_v16 = vpop.f32.mrf.mxu1  ;;  %v4283_v17 = vpop.f32.mrf.mxu0 }
 0x318   :  { %1802 = vrot.lane.b32.xlu0 %v1377_v11, %s3556_s26 }
 0x319   :  { %v4286_v41 = vpop.f32.mrf.mxu1  ;;  %v4288_v18 = vpop.f32.mrf.mxu0 }
 0x31b   :  { %v4290_v19 = vpop.f32.mrf.mxu1  ;;  %v4292_v20 = vpop.f32.mrf.mxu0 }
 0x31c   :  { %1810 = vrot.lane.b32.xlu0 %v1432_v14, %s3556_s26 }
 0x31d   :  { %v4295_v21 = vpop.f32.mrf.mxu0  ;;  %v4297_v22 = vpop.f32.mrf.mxu1 }
 0x31f   :  { %v1534_v23 = vpop.f32.mrf.mxu0  ;;  %v1481_v47 = vpop.f32.mrf.mxu1 }
 0x320   :  { %1832 = vrot.lane.b32.xlu1 %v1534_v23, %s3556_s26  ;;  %1798 = vrot.lane.b32.xlu0 %v1379_v13, %s3556_s26 }
 0x321   :  { %v1536_v24 = vpop.f32.mrf.mxu0  ;;  %v1483_v25 = vpop.f32.mrf.mxu1 }
 0x323   :  { %v1538_v43 = vpop.f32.mrf.mxu0  ;;  %v1485_v26 = vpop.f32.mrf.mxu1 }
 0x324   :  { %1838 = vrot.lane.b32.xlu1 %v1536_v24, %s3556_s26  ;;  %1816 = vrot.lane.b32.xlu0 %v1434_v44, %s3556_s26 }
 0x325   :  { %v1540_v27 = vpop.f32.mrf.mxu0  ;;  %v1487_v29 = vpop.f32.mrf.mxu1 }
 0x328   :  { %1804 = vrot.lane.b32.xlu0 %v1381_v15, %s3556_s26  ;;  %1826 = vrot.lane.b32.xlu1 %v1483_v25, %s3556_s26 }
 0x32c   :  { %1796 = vrot.lane.b32.xlu0 %v1375_v9, %s3556_s26  ;;  %1834 = vrot.lane.b32.xlu1 %v1538_v43, %s3556_s26 }
 0x330   :  { %1758 = vrot.lane.b32.xlu0 %v4295_v21, %s3556_s26  ;;  %1822 = vrot.lane.b32.xlu1 %v1485_v26, %s3556_s26 }
 0x334   :  { %1726 = vrot.lane.b32.xlu0 %v4277_v45, %s3556_s26  ;;  %1840 = vrot.lane.b32.xlu1 %v1540_v27, %s3556_s26  ;;  %v2021_v27 = vld [vmem:[%s5194_s4 + $0x8] sm:$0xff] }
 0x335   :  { %2105 = vmatprep.mubr.f32.mxu1 %v2021_v27 }
 0x338   :  { %1820 = vrot.lane.b32.xlu1 %v1481_v47, %s3556_s26 }
 0x33b   :  { %v4314_v30 = vpop.f32.mrf.mxu1  ;;  %v4316_v31 = vpop.f32.mrf.mxu0 }
 0x33c   :  { %5216 = vst [vmem:[#allocation2_spill] sm:$0xff] %v4314_v30  ;;  %5217 = vst [vmem:[#allocation3_spill] sm:$0xff] %v4316_v31  ;;  %1756 = vrot.lane.b32.xlu1 %v4288_v18, %s3556_s26 }
 0x33d   :  { %v4320_v32 = vpop.f32.mrf.mxu0  ;;  %v4322_v33 = vpop.f32.mrf.mxu1 }
 0x33e   :  { %5218 = vst [vmem:[#allocation4_spill] sm:$0xff] %v4322_v33 }
 0x33f   :  { %v4324_v34 = vpop.f32.mrf.mxu1  ;;  %v4326_v42 = vpop.f32.mrf.mxu0 }
 0x340   :  { %5219 = vst [vmem:[#allocation5_spill] sm:$0xff] %v4324_v34  ;;  %1724 = vrot.lane.b32.xlu1 %v4269_v6, %s3556_s26 }
 0x341   :  { %v4330_v40 = vpop.f32.mrf.mxu0  ;;  %v4332_v35 = vpop.f32.mrf.mxu1 }
 0x342   :  { %5220 = vst [vmem:[#allocation6_spill] sm:$0xff] %v4332_v35 }
 0x343   :  { %v1640_v36 = vpop.f32.mrf.mxu0  ;;  %v1587_v37 = vpop.f32.mrf.mxu1 }
 0x344   :  { %1856 = vrot.lane.b32.xlu0 %v1640_v36, %s3556_s26  ;;  %1828 = vrot.lane.b32.xlu1 %v1487_v29, %s3556_s26 }
 0x345   :  { %v1642_v38 = vpop.f32.mrf.mxu0  ;;  %v1589_v46 = vpop.f32.mrf.mxu1 }
 0x347   :  { %v1644_v48 = vpop.f32.mrf.mxu0  ;;  %v1591_v49 = vpop.f32.mrf.mxu1 }
 0x348   :  { %1862 = vrot.lane.b32.xlu0 %v1642_v38, %s3556_s26  ;;  %1750 = vrot.lane.b32.xlu1 %v4292_v20, %s3556_s26 }
 0x349   :  { %v1646_v50 = vpop.f32.mrf.mxu0  ;;  %v1593_v52 = vpop.f32.mrf.mxu1 }
 0x34c   :  { %1850 = vrot.lane.b32.xlu0 %v1589_v46, %s3556_s26  ;;  %1844 = vrot.lane.b32.xlu1 %v1587_v37, %s3556_s26 }
 0x350   :  { %1858 = vrot.lane.b32.xlu1 %v1644_v48, %s3556_s26 }
 0x354   :  { %1846 = vrot.lane.b32.xlu1 %v1591_v49, %s3556_s26 }
 0x358   :  { %1864 = vrot.lane.b32.xlu1 %v1646_v50, %s3556_s26 }
 0x35c   :  { %1718 = vrot.lane.b32.xlu1 %v4273_v8, %s3556_s26 }
 0x360   :  { %v4346_v53 = vpop.f32.mrf.mxu1  ;;  %1748 = vrot.lane.b32.xlu1 %v4283_v17, %s3556_s26 }
 0x361   :  { %5221 = vst [vmem:[#allocation7_spill] sm:$0xff] %v4346_v53 }
 0x362   :  { %v1685_v55 = vpop.f32.mrf.mxu1 }
 0x364   :  { %v4350_v56 = vpop.f32.mrf.mxu1  ;;  %1716 = vrot.lane.b32.xlu1 %v4265_v51, %s3556_s26 }
 0x365   :  { %5222 = vst [vmem:[#allocation8_spill] sm:$0xff] %v4350_v56 }
 0x366   :  { %v1688_v57 = vpop.f32.mrf.mxu1 }
 0x368   :  { %v4354_v58 = vpop.f32.mrf.mxu1  ;;  %1852 = vrot.lane.b32.xlu1 %v1593_v52, %s3556_s26 }
 0x36a   :  { %v1693_v59 = vpop.f32.mrf.mxu1 }
 0x36c   :  { %v4357_v60 = vpop.f32.mrf.mxu1  ;;  %1742 = vrot.lane.b32.xlu1 %v4297_v22, %s3556_s26 }
 0x36e   :  { %v1696_v61 = vpop.f32.mrf.mxu1 }
 0x382   :  { %v4361_v62 = vpop.permute.xlu0 %1808 }
 0x383   :  { %1876 = vrot.lane.b32.xlu0 %v4361_v62, %s3556_s26 }
 0x386   :  { %v4365_v63 = vpop.permute.xlu0 %1814 }
 0x387   :  { %1880 = vrot.lane.b32.xlu0 %v4365_v63, %s3556_s26 }
 0x38a   :  { %v4369_v0 = vpop.permute.xlu0 %1802 }
 0x38e   :  { %v4371_v1 = vpop.permute.xlu0 %1810 }
 0x38f   :  { %1878 = vrot.lane.b32.xlu0 %v4371_v1, %s3556_s26 }
 0x392   :  { %v4375_v28 = vpop.permute.xlu1 %1832  ;;  %v4377_v54 = vpop.permute.xlu0 %1798 }
 0x396   :  { %v4379_v2 = vpop.permute.xlu1 %1838  ;;  %v4381_v9 = vpop.permute.xlu0 %1816 }
 0x397   :  { %1882 = vrot.lane.b32.xlu0 %v4381_v9, %s3556_s26 }
 0x39a   :  { %v4385_v10 = vpop.permute.xlu1 %1826  ;;  %v4397_v13 = vpop.permute.xlu0 %1804 }
 0x39b   :  { %1892 = vrot.lane.b32.xlu0 %v4375_v28, %s3556_s26 }
 0x39e   :  { %v4389_v11 = vpop.permute.xlu1 %1834  ;;  %v4429_v24 = vpop.permute.xlu0 %1796 }
 0x39f   :  { %1896 = vrot.lane.b32.xlu0 %v4379_v2, %s3556_s26 }
 0x3a2   :  { %v4393_v12 = vpop.permute.xlu1 %1822  ;;  %v1759_v43 = vpop.permute.xlu0 %1758 }
 0x3a3   :  { %1894 = vrot.lane.b32.xlu0 %v4389_v11, %s3556_s26 }
 0x3a6   :  { %v4399_v14 = vpop.permute.xlu1 %1840  ;;  %v1727_v36 = vpop.permute.xlu0 %1726 }
 0x3a7   :  { %1874 = vrot.lane.b32.xlu0 %v4397_v13, %s3556_s26  ;;  %1898 = vrot.lane.b32.xlu1 %v4399_v14, %s3556_s26 }
 0x3aa   :  { %v4405_v15 = vpop.permute.xlu1 %1820 }
 0x3ab   :  { %1888 = vrot.lane.b32.xlu0 %v4385_v10, %s3556_s26  ;;  %1710 = vrot.lane.b32.xlu1 %v4275_v39, %s3556_s26 }
 0x3ae   :  { %v4411_v44 = vpop.permute.xlu1 %1756 }
 0x3af   :  { %1872 = vrot.lane.b32.xlu0 %v4369_v0, %s3556_s26  ;;  %1740 = vrot.lane.b32.xlu1 %v4286_v41, %s3556_s26 }
 0x3b2   :  { %v4417_v23 = vpop.permute.xlu1 %1724 }
 0x3b3   :  { %1886 = vrot.lane.b32.xlu0 %v4393_v12, %s3556_s26  ;;  %1708 = vrot.lane.b32.xlu1 %v4267_v5, %s3556_s26 }
 0x3b6   :  { %v4423_v47 = vpop.permute.xlu1 %1828  ;;  %v4456_v38 = vpop.permute.xlu0 %1856 }
 0x3b7   :  { %1890 = vrot.lane.b32.xlu0 %v4423_v47, %s3556_s26  ;;  %1734 = vrot.lane.b32.xlu1 %v4290_v19, %s3556_s26 }
 0x3ba   :  { %v4431_v25 = vpop.permute.xlu1 %1750  ;;  %v4464_v48 = vpop.permute.xlu0 %1862 }
 0x3bb   :  { %1870 = vrot.lane.b32.xlu0 %v4377_v54, %s3556_s26  ;;  %1702 = vrot.lane.b32.xlu1 %v4271_v7, %s3556_s26 }
 0x3be   :  { %v4437_v26 = vpop.permute.xlu1 %1844  ;;  %v4484_v57 = vpop.permute.xlu0 %1850 }
 0x3bf   :  { %5223 = vst [vmem:[#allocation9_spill] sm:$0xff] %v4437_v26  ;;  %1884 = vrot.lane.b32.xlu0 %v4405_v15, %s3556_s26  ;;  %1732 = vrot.lane.b32.xlu1 %v4281_v16, %s3556_s26  ;;  %5226 = vst [vmem:[#allocation12_spill] sm:$0xff] %v4484_v57 }
 0x3c2   :  { %v4446_v29 = vpop.permute.xlu1 %1858 }
 0x3c3   :  { %1868 = vrot.lane.b32.xlu0 %v4429_v24, %s3556_s26  ;;  %1700 = vrot.lane.b32.xlu1 %v4263_v4, %s3556_s26 }
 0x3c6   :  { %v4452_v37 = vpop.permute.xlu1 %1846 }
 0x3c7   :  { %5224 = vst [vmem:[#allocation10_spill] sm:$0xff] %v4452_v37  ;;  %1790 = vrot.lane.b32.xlu1 %v4330_v40, %s3556_s26 }
 0x3ca   :  { %v4458_v46 = vpop.permute.xlu1 %1864 }
 0x3cb   :  { %1914 = vrot.lane.b32.xlu0 %v4458_v46, %s3556_s26  ;;  %1788 = vrot.lane.b32.xlu1 %v4320_v32, %s3556_s26 }
 0x3ce   :  { %v1719_v49 = vpop.permute.xlu1 %1718 }
 0x3cf   :  { %1912 = vrot.lane.b32.xlu0 %v4464_v48, %s3556_s26  ;;  %1782 = vrot.lane.b32.xlu1 %v4326_v42, %s3556_s26 }
 0x3d2   :  { %v1749_v50 = vpop.permute.xlu1 %1748 }
 0x3d3   :  { %1910 = vrot.lane.b32.xlu0 %v4446_v29, %s3556_s26  ;;  %1780 = vrot.lane.b32.xlu1 %v4316_v31, %s3556_s26  ;;  %v1999_v31 = vsel %vm551_vm2, %v4295_v21, %v4399_v14 }
 0x3d6   :  { %v1717_v52 = vpop.permute.xlu1 %1716 }
 0x3d7   :  { %1908 = vrot.lane.b32.xlu0 %v4456_v38, %s3556_s26  ;;  %1774 = vrot.lane.b32.xlu1 %v4332_v35, %s3556_s26 }
 0x3da   :  { %v4478_v55 = vpop.permute.xlu1 %1852 }
 0x3db   :  { %5225 = vst [vmem:[#allocation11_spill] sm:$0xff] %v4478_v55  ;;  %1772 = vrot.lane.b32.xlu1 %v4322_v33, %s3556_s26  ;;  %1906 = vrot.lane.b32.xlu0 %v4478_v55, %s3556_s26 }
 0x3df   :  { %1766 = vrot.lane.b32.xlu1 %v4324_v34, %s3556_s26  ;;  %1904 = vrot.lane.b32.xlu0 %v4484_v57, %s3556_s26  ;;  %v1743_v34 = vpop.permute.xlu1 %1742 }
 0x3e3   :  { %1764 = vrot.lane.b32.xlu1 %v4314_v30, %s3556_s26  ;;  %1902 = vrot.lane.b32.xlu0 %v4452_v37, %s3556_s26 }
 0x3e7   :  { %1900 = vrot.lane.b32.xlu0 %v4437_v26, %s3556_s26  ;;  %1918 = vrot.lane.b32.xlu1 %v4357_v60, %s3556_s26 }
 0x3eb   :  { %1916 = vrot.lane.b32.xlu0 %v4354_v58, %s3556_s26 }
 0x3f5   :  { %v1877_v59 = vpop.permute.xlu0 %1876 }
 0x3f9   :  { %v1881_v61 = vpop.permute.xlu0 %1880 }
 0x3fa   :  { %v1984_v58 = vsel %vm551_vm2, %v4417_v23, %v1881_v61  ;;  %v2015_v61 = vsel %vm551_vm2, %v4330_v40, %v4458_v46 }
 0x401   :  { %v1879_v27 = vpop.permute.xlu0 %1878 }
 0x409   :  { %v1883_v3 = vpop.permute.xlu0 %1882 }
 0x40a   :  { %v1985_v26 = vsel %vm551_vm2, %v1727_v36, %v1883_v3  ;;  %v1983_v3 = vsel %vm551_vm2, %v4277_v45, %v4381_v9  ;;  %v1980_v9 = vsel %vm551_vm2, %v1717_v52, %v1877_v59  ;;  %v2023_v59 = vld [vmem:[%s5194_s4 + $0x18] sm:$0xff] }
 0x40d   :  { %v1893_v53 = vpop.permute.xlu0 %1892 }
 0x40e   :  { %v1996_v45 = vsel %vm551_vm2, %v1749_v50, %v1893_v53  ;;  %v1994_v53 = vsel %vm551_vm2, %v4283_v17, %v4375_v28  ;;  %v1991_v28 = vsel %vm551_vm2, %v4297_v22, %v4423_v47 }
 0x411   :  { %v1897_v56 = vpop.permute.xlu0 %1896 }
 0x412   :  { %v2000_v60 = vsel %vm551_vm2, %v4411_v44, %v1897_v56  ;;  %v1998_v56 = vsel %vm551_vm2, %v4288_v18, %v4379_v2 }
 0x415   :  { %v1895_v30 = vpop.permute.xlu0 %1894 }
 0x416   :  { %v1997_v21 = vsel %vm551_vm2, %v4431_v25, %v1895_v30  ;;  %v1979_v30 = vsel %vm551_vm2, %v4273_v8, %v4371_v1  ;;  %v1978_v25 = vsel %vm551_vm2, %v4265_v51, %v4361_v62  ;;  %v1975_v51 = vsel %vm551_vm2, %v4275_v39, %v4397_v13 }
 0x417   :  { %v1974_v62 = vsel %vm551_vm2, %v4267_v5, %v4369_v0  ;;  %v1971_v5 = vsel %vm551_vm2, %v4271_v7, %v4377_v54  ;;  %v5227_v7 = vmov 0.0  }
 0x419   :  { %v1875_v33 = vpop.permute.xlu0 %1874  ;;  %v1899_v57 = vpop.permute.xlu1 %1898 }
 0x41a   :  { %v2001_v37 = vsel %vm551_vm2, %v1759_v43, %v1899_v57  ;;  %v1982_v43 = vsel %vm551_vm2, %v4269_v6, %v4365_v63  ;;  %v1995_v6 = vsel %vm551_vm2, %v4292_v20, %v4389_v11 }
 0x41b   :  { %3145 = vmatprep.subr.mxu1 %v2001_v37  ;;  %v1986_v37 = vsel %vm551_vm2, %v4281_v16, %v4405_v15  ;;  %v2024_v16 = vld [vmem:[%s5194_s4 + $0x20] sm:$0xff] }
 0x41c   :  { %3146 = vmatpush3.msra.mxu1 %v1985_v26 }
 0x41d   :  { %v1889_v35 = vpop.permute.xlu0 %1888  ;;  %3147 = vmatprep.subr.mxu1 %v2000_v60  ;;  %v1711_v55 = vpop.permute.xlu1 %1710 }
 0x41e   :  { %3148 = vmatpush3.msra.mxu1 %v1984_v58  ;;  %v1977_v11 = vsel %vm551_vm2, %v1711_v55, %v1875_v33  ;;  %v1990_v33 = vsel %vm551_vm2, %v4286_v41, %v4385_v10  ;;  %v1987_v10 = vsel %vm551_vm2, %v4290_v19, %v4393_v12  ;;  %v1970_v19 = vsel %vm551_vm2, %v4263_v4, %v4429_v24  ;;  %v2025_v12 = vld [vmem:[%s5194_s4 + $0x28] sm:$0xff]  ;;  %v2028_v55 = vld [vmem:[%s5194_s4 + $0x40] sm:$0xff] }
 0x41f   :  { %3149 = vmatprep.subr.mxu1 %v1999_v31  ;;  %v1981_v31 = vsel %vm551_vm2, %v1719_v49, %v1879_v27  ;;  %v2020_v49 = vld [vmem:[%s5194_s4] sm:$0xff]  ;;  %v2029_v4 = vld [vmem:[%s5194_s4 + $0x48] sm:$0xff]  ;;  %v2014_v58 = vsel %vm551_vm2, %v4320_v32, %v4464_v48 }
 0x420   :  { %3150 = vmatpush3.msra.mxu1 %v1983_v3 }
 0x421   :  { %v1873_v44 = vpop.permute.xlu0 %1872  ;;  %3151 = vmatprep.subr.mxu1 %v1998_v56  ;;  %v1741_v23 = vpop.permute.xlu1 %1740 }
 0x422   :  { %3152 = vmatpush3.msra.mxu1 %v1982_v43  ;;  %v1992_v8 = vsel %vm551_vm2, %v1741_v23, %v1889_v35  ;;  %v5228_v23 = vld [vmem:[#allocation3_spill] sm:$0xff] }
 0x423   :  { %3153 = vmatprep.subr.mxu1 %v1997_v21  ;;  %v2010_v43 = vsel %vm551_vm2, %v5228_v23, %v4456_v38 }
 0x424   :  { %3154 = vmatpush3.msra.mxu1 %v1981_v31 }
 0x425   :  { %v1887_v18 = vpop.permute.xlu0 %1886  ;;  %3155 = vmatprep.subr.mxu1 %v1996_v45  ;;  %v1709_v2 = vpop.permute.xlu1 %1708 }
 0x426   :  { %3156 = vmatpush3.msra.mxu1 %v1980_v9  ;;  %v1976_v1 = vsel %vm551_vm2, %v1709_v2, %v1873_v44  ;;  %v2011_v44 = vsel %vm551_vm2, %v4326_v42, %v4446_v29  ;;  %v5229_v42 = vld [vmem:[#allocation11_spill] sm:$0xff]  ;;  %v5230_v29 = vld [vmem:[#allocation6_spill] sm:$0xff]  ;;  %v5231_v2 = vld [vmem:[#allocation12_spill] sm:$0xff] }
 0x427   :  { %3157 = vmatprep.subr.mxu1 %v1995_v6  ;;  %v5232_v6 = vld [vmem:[#allocation4_spill] sm:$0xff] }
 0x428   :  { %3158 = vmatpush3.msra.mxu1 %v1979_v30  ;;  %v2006_v30 = vsel %vm551_vm2, %v5232_v6, %v5231_v2 }
 0x429   :  { %v1891_v63 = vpop.permute.xlu0 %1890  ;;  %3159 = vmatprep.subr.mxu1 %v1994_v53  ;;  %v1735_v14 = vpop.permute.xlu1 %1734 }
 0x42a   :  { %3160 = vmatpush3.msra.mxu1 %v1978_v25  ;;  %v1993_v20 = vsel %vm551_vm2, %v1743_v34, %v1891_v63  ;;  %v1989_v22 = vsel %vm551_vm2, %v1735_v14, %v1887_v18  ;;  %v2007_v18 = vsel %vm551_vm2, %v5230_v29, %v5229_v42 }
 0x42b   :  { %3161 = vmatprep.subr.mxu1 %v1993_v20  ;;  %v5233_v20 = vld [vmem:[#allocation10_spill] sm:$0xff] }
 0x42c   :  { %3162 = vmatpush3.msra.mxu1 %v1977_v11  ;;  %v5234_v11 = vld [vmem:[#allocation5_spill] sm:$0xff] }
 0x42d   :  { %v1871_v26 = vpop.permute.xlu0 %1870  ;;  %3163 = vmatprep.subr.mxu1 %v1992_v8  ;;  %v1703_v17 = vpop.permute.xlu1 %1702  ;;  %v2003_v8 = vsel %vm551_vm2, %v5234_v11, %v5233_v20 }
 0x42e   :  { %3164 = vmatpush3.msra.mxu1 %v1976_v1  ;;  %v1973_v47 = vsel %vm551_vm2, %v1703_v17, %v1871_v26  ;;  %v5235_v26 = vld [vmem:[#allocation9_spill] sm:$0xff]  ;;  %v5236_v17 = vld [vmem:[#allocation2_spill] sm:$0xff] }
 0x42f   :  { %3165 = vmatprep.subr.mxu1 %v1991_v28  ;;  %v2002_v28 = vsel %vm551_vm2, %v5236_v17, %v5235_v26 }
 0x430   :  { %3166 = vmatpush3.msra.mxu1 %v1975_v51 }
 0x431   :  { %v1885_v34 = vpop.permute.xlu0 %1884  ;;  %3167 = vmatprep.subr.mxu1 %v1990_v33  ;;  %v1733_v35 = vpop.permute.xlu1 %1732  ;;  %v5237_v33 = vld [vmem:[#allocation8_spill] sm:$0xff] }
 0x432   :  { %3168 = vmatpush3.msra.mxu1 %v1974_v62  ;;  %v1988_v39 = vsel %vm551_vm2, %v1733_v35, %v1885_v34  ;;  %v2022_v35 = vld [vmem:[%s5194_s4 + $0x10] sm:$0xff]  ;;  %v5238_v62 = vld [vmem:[#allocation7_spill] sm:$0xff] }
 0x433   :  { %3169 = vmatprep.subr.mxu1 %v1989_v22 }
 0x434   :  { %3170 = vmatpush3.msra.mxu1 %v1973_v47  ;;  %v2027_v47 = vld [vmem:[%s5194_s4 + $0x38] sm:$0xff] }
 0x435   :  { %v1869_v13 = vpop.permute.xlu0 %1868  ;;  %3171 = vmatprep.subr.mxu1 %v1988_v39  ;;  %v1701_v36 = vpop.permute.xlu1 %1700  ;;  %v2026_v39 = vld [vmem:[%s5194_s4 + $0x30] sm:$0xff] }
 0x436   :  { %v1972_v41 = vsel %vm551_vm2, %v1701_v36, %v1869_v13  ;;  %v2031_v13 = vld [vmem:[%s5194_s4 + $0x58] sm:$0xff]  ;;  %v2030_v36 = vld [vmem:[%s5194_s4 + $0x50] sm:$0xff] }
 0x437   :  { %3172 = vmatpush3.msra.mxu1 %v1972_v41 }
 0x438   :  { %3173 = vmatprep.subr.mxu1 %v1987_v10 }
 0x439   :  { %3174 = vmatpush3.msra.mxu1 %v1971_v5  ;;  %v1791_v0 = vpop.permute.xlu1 %1790 }
 0x43a   :  { %3175 = vmatprep.subr.mxu1 %v1986_v37 }
 0x43b   :  { %3176 = vmatpush3.msra.mxu1 %v1970_v19 }
 0x43c   :  { %2121 = vmatprep.subr.mxu1 %v5227_v7  ;;  %2106 = vmatmul.mubr.f32.vlgmr.msra.gmra.mxu1 %v2020_v49 }
 0x43d   :  { %v1915_v54 = vpop.permute.xlu0 %1914  ;;  %v1789_v50 = vpop.permute.xlu1 %1788  ;;  %2110 = vmatprep.mubr.f32.mxu1 %v2025_v12 }
 0x43e   :  { %v2017_v15 = vsel %vm551_vm2, %v1791_v0, %v1915_v54 }
 0x43f   :  { %2122 = vmatpush1.msra.mxu1 %v2017_v15 }
 0x440   :  { %2123 = vmatprep.subr.mxu1 %v5227_v7  ;;  %2111 = vmatmul.mubr.f32.gmra.mxu1 %v2024_v16 }
 0x441   :  { %v1913_v24 = vpop.permute.xlu0 %1912  ;;  %v1783_v52 = vpop.permute.xlu1 %1782  ;;  %2115 = vmatprep.mubr.f32.mxu1 %v2029_v4  ;;  %v2232_v4 = vld [vmem:[%s5195_s5 + $0x8] sm:$0xff] }
 0x442   :  { %v2016_v57 = vsel %vm551_vm2, %v1789_v50, %v1913_v24 }
 0x443   :  { %2124 = vmatpush1.msra.mxu1 %v2016_v57 }
 0x444   :  { %2125 = vmatprep.subr.mxu1 %v5227_v7  ;;  %2116 = vmatmul.mubr.f32.gmra.mxu1 %v2028_v55 }
 0x445   :  { %v1911_v27 = vpop.permute.xlu0 %1910  ;;  %2126 = vmatpush1.msra.mxu1 %v2015_v61  ;;  %v1781_v60 = vpop.permute.xlu1 %1780  ;;  %3133 = vmatprep.mubr.msk.f32.mxu1 %vm1324_vm3, %v2023_v59 }
 0x446   :  { %2127 = vmatprep.subr.mxu1 %v5227_v7  ;;  %v2013_v3 = vsel %vm551_vm2, %v1783_v52, %v1911_v27  ;;  %v2231_v27 = vld [vmem:[%s5195_s5] sm:$0xff] }
 0x447   :  { %2128 = vmatpush1.msra.mxu1 %v2014_v58 }
 0x448   :  { %2129 = vmatprep.subr.mxu1 %v5227_v7 }
 0x449   :  { %v1909_v56 = vpop.permute.xlu0 %1908  ;;  %2130 = vmatpush1.msra.mxu1 %v2013_v3  ;;  %v1775_v40 = vpop.permute.xlu1 %1774 }
 0x44a   :  { %v2012_v46 = vsel %vm551_vm2, %v1781_v60, %v1909_v56  ;;  %2131 = vmatprep.subr.mxu1 %v5227_v7  ;;  %v2233_v60 = vld [vmem:[%s5195_s5 + $0x10] sm:$0xff]  ;;  %s3558_s5 = smov 118  }
 0x44b   :  { %2132 = vmatpush1.msra.mxu1 %v2012_v46 }
 0x44c   :  { %2133 = vmatprep.subr.mxu1 %v5227_v7 }
 0x44d   :  { %v1907_v32 = vpop.permute.xlu0 %1906  ;;  %2134 = vmatpush1.msra.mxu1 %v2011_v44  ;;  %v1773_v48 = vpop.permute.xlu1 %1772 }
 0x44e   :  { %2135 = vmatprep.subr.mxu1 %v5227_v7  ;;  %v2009_v21 = vsel %vm551_vm2, %v1775_v40, %v1907_v32 }
 0x44f   :  { %2136 = vmatpush1.msra.mxu1 %v2010_v43 }
 0x450   :  { %2137 = vmatprep.subr.mxu1 %v5227_v7 }
 0x451   :  { %v1905_v31 = vpop.permute.xlu0 %1904  ;;  %2138 = vmatpush1.msra.mxu1 %v2009_v21  ;;  %v1767_v45 = vpop.permute.xlu1 %1766 }
 0x452   :  { %v2008_v9 = vsel %vm551_vm2, %v1773_v48, %v1905_v31  ;;  %2139 = vmatprep.subr.mxu1 %v5227_v7 }
 0x453   :  { %2140 = vmatpush1.msra.mxu1 %v2008_v9 }
 0x454   :  { %2141 = vmatprep.subr.mxu1 %v5227_v7 }
 0x455   :  { %v1903_v38 = vpop.permute.xlu0 %1902  ;;  %2142 = vmatpush1.msra.mxu1 %v2007_v18  ;;  %v1765_v53 = vpop.permute.xlu1 %1764 }
 0x456   :  { %2143 = vmatprep.subr.mxu1 %v5227_v7  ;;  %v2005_v63 = vsel %vm551_vm2, %v1767_v45, %v1903_v38 }
 0x457   :  { %2144 = vmatpush1.msra.mxu1 %v2006_v30 }
 0x458   :  { %2145 = vmatprep.subr.mxu1 %v5227_v7 }
 0x459   :  { %v1901_v14 = vpop.permute.xlu0 %1900  ;;  %2146 = vmatpush1.msra.mxu1 %v2005_v63  ;;  %v1919_v1 = vpop.permute.xlu1 %1918 }
 0x45a   :  { %v2004_v25 = vsel %vm551_vm2, %v1765_v53, %v1901_v14  ;;  %2147 = vmatprep.subr.mxu1 %v5227_v7  ;;  %v2019_v34 = vsel %vm551_vm2, %v5237_v33, %v1919_v1 }
 0x45b   :  { %2148 = vmatpush1.msra.mxu1 %v2004_v25 }
 0x45c   :  { %2149 = vmatprep.subr.mxu1 %v5227_v7 }
 0x45d   :  { %2150 = vmatpush1.msra.mxu1 %v2003_v8  ;;  %v1917_v51 = vpop.permute.xlu0 %1916 }
 0x45e   :  { %2151 = vmatprep.subr.mxu1 %v5227_v7  ;;  %v2018_v22 = vsel %vm551_vm2, %v5238_v62, %v1917_v51 }
 0x45f   :  { %2152 = vmatpush1.msra.mxu1 %v2002_v28 }
 0x460   :  { %2181 = vmatprep.subr.mxu1 %v5227_v7 }
 0x461   :  { %2182 = vmatpush2.msra.mxu1 %v2019_v34 }
 0x462   :  { %2183 = vmatprep.subr.mxu1 %v5227_v7 }
 0x463   :  { %2184 = vmatpush2.msra.mxu1 %v2018_v22 }
 0x464   :  { %2186 = vmatmul.mubr.f32.vlgmr.msra.gmra.mxu1 %v2022_v35 }
 0x465   :  { %3134 = vmatprep.mubr.msk.f32.mxu1 %vm1324_vm3, %v2027_v47 }
 0x468   :  { %2191 = vmatmul.mubr.f32.gmra.mxu1 %v2026_v39 }
 0x469   :  { %3135 = vmatprep.mubr.msk.f32.mxu1 %vm1324_vm3, %v2031_v13 }
 0x46c   :  { %2196 = vmatmul.mubr.f32.gmra.mxu1 %v2030_v36 }
 0x4fc   :  { %v3177_v41 = vpop.f32.mrf.mxu1 }
 0x4fe   :  { %v3178_v10 = vpop.f32.mrf.mxu1 }
 0x4ff   :  { %v3179_v19 = vadd.f32 %v3178_v10, %v3177_v41 }
 0x500   :  { %v3180_v5 = vpop.f32.mrf.mxu1 }
 0x502   :  { %v3181_v0 = vpop.f32.mrf.mxu1 }
 0x503   :  { %v3182_v16 = vadd.f32 %v3181_v0, %v3180_v5 }
 0x504   :  { %v3183_v37 = vpop.f32.mrf.mxu1 }
 0x506   :  { %v3184_v49 = vpop.f32.mrf.mxu1 }
 0x507   :  { %v3185_v55 = vadd.f32 %v3184_v49, %v3183_v37 }
 0x524   :  { %v2187_v12 = vpop.f32.mrf.mxu1 }
 0x525   :  { %v2188_v54 = vadd.f32 %v3179_v19, %v2187_v12 }
 0x526   :  { %v2189_v50 = vpop.f32.mrf.mxu1 }
 0x527   :  { %2204 = vrot.lane.b32.xlu0 %v2188_v54, %s3557_s21 }
 0x528   :  { %v2192_v15 = vpop.f32.mrf.mxu1 }
 0x529   :  { %v2193_v24 = vadd.f32 %v3182_v16, %v2192_v15 }
 0x52a   :  { %v2194_v52 = vpop.f32.mrf.mxu1 }
 0x52b   :  { %2206 = vrot.lane.b32.xlu1 %v2193_v24, %s3557_s21  ;;  %2241 = vperm.xlu0 %3374, %v2232_v4  }
 0x52c   :  { %v2197_v57 = vpop.f32.mrf.mxu1 }
 0x52d   :  { %v2198_v59 = vadd.f32 %v3185_v55, %v2197_v57 }
 0x52e   :  { %v2199_v61 = vpop.f32.mrf.mxu1 }
 0x52f   :  { %2208 = vrot.lane.b32.xlu1 %v2198_v59, %s3557_s21  ;;  %s3559_s21 = smov 123  }
 0x533   :  { %2236 = vperm.xlu1 %3375, %v2231_v27  }
 0x537   :  { %2246 = vperm.xlu1 %3375, %v2233_v60  }
 0x599   :  { %v2205_v58 = vpop.permute.xlu0 %2204 }
 0x59a   :  { %v2213_v3 = vmax.f32 %v2188_v54, %v2205_v58 }
 0x59c   :  { %2219 = vrot.lane.b32.xlu0 %v2213_v3, %s3555_s0 }
 0x59d   :  { %v2207_v56 = vpop.permute.xlu1 %2206 }
 0x59e   :  { %v2214_v40 = vmax.f32 %v2193_v24, %v2207_v56 }
 0x5a0   :  { %2221 = vrot.lane.b32.xlu0 %v2214_v40, %s3555_s0 }
 0x5a1   :  { %v2209_v46 = vpop.permute.xlu1 %2208 }
 0x5a2   :  { %v2215_v44 = vmax.f32 %v2198_v59, %v2209_v46  ;;  %v2587_v59 = vld [vmem:[%s5196_s6 + $0x8] sm:$0xff] }
 0x5a3   :  { %2713 = vmatprep.mubr.f32.mxu0 %v2587_v59 }
 0x5a4   :  { %2223 = vrot.lane.b32.xlu1 %v2215_v44, %s3555_s0  ;;  %s3561_s0 = smov 124  }
 0x5a6   :  { %v2242_v32 = vpop.permute.xlu0 %2241 }
 0x5ae   :  { %v2237_v43 = vpop.permute.xlu1 %2236 }
 0x5b2   :  { %v2247_v18 = vpop.permute.xlu1 %2246 }
 0x60e   :  { %v2220_v48 = vpop.permute.xlu0 %2219 }
 0x60f   :  { %v2228_v23 = vmax.f32 %v2213_v3, %v2220_v48  ;;  %v2612_v48 = vld [vmem:[%s5197_s7 + $0x28] sm:$0xff] }
 0x611   :  { %v2249_v21 = vadd.f32 %v2237_v43, %v2228_v23  ;;  %v2609_v23 = vld [vmem:[%s5197_s7 + $0x10] sm:$0xff]  ;;  %v2610_v43 = vld [vmem:[%s5197_s7 + $0x18] sm:$0xff] }
 0x612   :  { %v2222_v45 = vpop.permute.xlu0 %2221 }
 0x613   :  { %v4672_v31 = vmax.f32 %v2249_v21, 0.0  ;;  %v2229_v9 = vmax.f32 %v2214_v40, %v2222_v45  ;;  %v2613_v40 = vld [vmem:[%s5197_s7 + $0x30] sm:$0x3] }
 0x615   :  { %2339 = vrot.lane.b32.xlu0 %v4672_v31, %s3558_s5  ;;  %2294 = vrot.lane.b32.xlu1 %v4672_v31, %s3559_s21  ;;  %v2250_v42 = vadd.f32 %v2242_v32, %v2229_v9  ;;  %v2611_v32 = vld [vmem:[%s5197_s7 + $0x20] sm:$0xff] }
 0x616   :  { %v2224_v38 = vpop.permute.xlu1 %2223  ;;  %v2607_v9 = vld [vmem:[%s5197_s7] sm:$0xff] }
 0x617   :  { %v4702_v29 = vmax.f32 %v2250_v42, 0.0  ;;  %v2230_v2 = vmax.f32 %v2215_v44, %v2224_v38  ;;  %v2608_v42 = vld [vmem:[%s5197_s7 + $0x8] sm:$0xff] }
 0x618   :  { %v2859_v38 = vld [vmem:[%s5198_s9 + $0x8] sm:$0x3] }
 0x619   :  { %2330 = vrot.lane.b32.xlu0 %v4672_v31, %s3560_s25  ;;  %2285 = vrot.lane.b32.xlu1 %v4672_v31, %s3561_s0  ;;  %v2251_v6 = vadd.f32 %v2247_v18, %v2230_v2  ;;  %v2858_v2 = vld [vmem:[%s5198_s9] sm:$0xff] }
 0x61b   :  { %v4732_v30 = vmax.f32 %v2251_v6, 0.0 }
 0x61d   :  { %2321 = vrot.lane.b32.xlu0 %v4672_v31, %s3562_s27  ;;  %2276 = vrot.lane.b32.xlu1 %v4672_v31, %s3563_s28 }
 0x621   :  { %2312 = vrot.lane.b32.xlu0 %v4672_v31, %s3564_s29  ;;  %2267 = vrot.lane.b32.xlu1 %v4672_v31, %s3565_s30 }
 0x625   :  { %2303 = vrot.lane.b32.xlu0 %v4672_v31, %s3566_s11  ;;  %2258 = vrot.lane.b32.xlu1 %v4672_v31, %s3567_s12 }
 0x629   :  { %2375 = vrot.lane.b32.xlu0 %v4672_v31, %s3568_s13  ;;  %2384 = vrot.lane.b32.xlu1 %v4672_v31, %s3569_s14 }
 0x62d   :  { %2357 = vrot.lane.b32.xlu0 %v4672_v31, %s3570_s15  ;;  %2366 = vrot.lane.b32.xlu1 %v4672_v31, %s3571_s16 }
 0x631   :  { %2348 = vrot.lane.b32.xlu0 %v4672_v31, %s3572_s2  ;;  %2287 = vrot.lane.b32.xlu1 %v4702_v29, %s3561_s0 }
 0x635   :  { %2278 = vrot.lane.b32.xlu1 %v4702_v29, %s3563_s28  ;;  %2341 = vrot.lane.b32.xlu0 %v4702_v29, %s3558_s5 }
 0x639   :  { %2269 = vrot.lane.b32.xlu1 %v4702_v29, %s3565_s30  ;;  %2332 = vrot.lane.b32.xlu0 %v4702_v29, %s3560_s25 }
 0x63d   :  { %2260 = vrot.lane.b32.xlu1 %v4702_v29, %s3567_s12  ;;  %2323 = vrot.lane.b32.xlu0 %v4702_v29, %s3562_s27 }
 0x641   :  { %2377 = vrot.lane.b32.xlu1 %v4702_v29, %s3568_s13  ;;  %2314 = vrot.lane.b32.xlu0 %v4702_v29, %s3564_s29 }
 0x645   :  { %2359 = vrot.lane.b32.xlu1 %v4702_v29, %s3570_s15  ;;  %2305 = vrot.lane.b32.xlu0 %v4702_v29, %s3566_s11 }
 0x649   :  { %2350 = vrot.lane.b32.xlu1 %v4702_v29, %s3572_s2  ;;  %2296 = vrot.lane.b32.xlu0 %v4702_v29, %s3559_s21 }
 0x64d   :  { %2289 = vrot.lane.b32.xlu1 %v4732_v30, %s3561_s0  ;;  %2386 = vrot.lane.b32.xlu0 %v4702_v29, %s3569_s14 }
 0x651   :  { %2280 = vrot.lane.b32.xlu1 %v4732_v30, %s3563_s28  ;;  %2368 = vrot.lane.b32.xlu0 %v4702_v29, %s3571_s16 }
 0x655   :  { %2271 = vrot.lane.b32.xlu1 %v4732_v30, %s3565_s30  ;;  %2334 = vrot.lane.b32.xlu0 %v4732_v30, %s3560_s25 }
 0x659   :  { %2262 = vrot.lane.b32.xlu1 %v4732_v30, %s3567_s12  ;;  %2325 = vrot.lane.b32.xlu0 %v4732_v30, %s3562_s27 }
 0x65d   :  { %2298 = vrot.lane.b32.xlu1 %v4732_v30, %s3559_s21  ;;  %2316 = vrot.lane.b32.xlu0 %v4732_v30, %s3564_s29 }
 0x661   :  { %2388 = vrot.lane.b32.xlu1 %v4732_v30, %s3569_s14  ;;  %2307 = vrot.lane.b32.xlu0 %v4732_v30, %s3566_s11 }
 0x665   :  { %2370 = vrot.lane.b32.xlu1 %v4732_v30, %s3571_s16  ;;  %2379 = vrot.lane.b32.xlu0 %v4732_v30, %s3568_s13 }
 0x669   :  { %2352 = vrot.lane.b32.xlu1 %v4732_v30, %s3572_s2  ;;  %2361 = vrot.lane.b32.xlu0 %v4732_v30, %s3570_s15 }
 0x66d   :  { %2343 = vrot.lane.b32.xlu1 %v4732_v30, %s3558_s5 }
 0x687   :  { %v4768_v53 = vpop.permute.xlu1 %2294  ;;  %v4770_v63 = vpop.permute.xlu0 %2339 }
 0x688   :  { %2423 = vrot.lane.b32.xlu0 %v4768_v53, %s3573_s17  ;;  %2453 = vrot.lane.b32.xlu1 %v4770_v63, %s3573_s17 }
 0x68b   :  { %v4776_v14 = vpop.permute.xlu1 %2285  ;;  %v4778_v25 = vpop.permute.xlu0 %2330 }
 0x68c   :  { %2417 = vrot.lane.b32.xlu0 %v4776_v14, %s3573_s17  ;;  %2447 = vrot.lane.b32.xlu1 %v4778_v25, %s3573_s17 }
 0x68f   :  { %v4784_v20 = vpop.permute.xlu1 %2276  ;;  %v4786_v11 = vpop.permute.xlu0 %2321 }
 0x690   :  { %2411 = vrot.lane.b32.xlu0 %v4784_v20, %s3573_s17  ;;  %2441 = vrot.lane.b32.xlu1 %v4786_v11, %s3573_s17 }
 0x693   :  { %v4792_v8 = vpop.permute.xlu1 %2267  ;;  %v4794_v1 = vpop.permute.xlu0 %2312 }
 0x694   :  { %2405 = vrot.lane.b32.xlu0 %v4792_v8, %s3573_s17  ;;  %2435 = vrot.lane.b32.xlu1 %v4794_v1, %s3573_s17 }
 0x697   :  { %v4800_v26 = vpop.permute.xlu1 %2258  ;;  %v4802_v17 = vpop.permute.xlu0 %2303 }
 0x69b   :  { %v4804_v28 = vpop.permute.xlu1 %2384  ;;  %v4806_v51 = vpop.permute.xlu0 %2375 }
 0x69f   :  { %v4808_v33 = vpop.permute.xlu1 %2366  ;;  %v4810_v34 = vpop.permute.xlu0 %2357 }
 0x6a3   :  { %v4812_v35 = vpop.permute.xlu1 %2287  ;;  %v4814_v62 = vpop.permute.xlu0 %2348 }
 0x6a4   :  { %5239 = vst [vmem:[#allocation3_spill] sm:$0xff] %v4814_v62 }
 0x6a7   :  { %v4816_v22 = vpop.permute.xlu1 %2278  ;;  %v4818_v47 = vpop.permute.xlu0 %2341 }
 0x6a8   :  { %2455 = vrot.lane.b32.xlu0 %v4818_v47, %s3573_s17 }
 0x6ab   :  { %v4822_v39 = vpop.permute.xlu1 %2269  ;;  %v4824_v13 = vpop.permute.xlu0 %2332 }
 0x6ac   :  { %2419 = vrot.lane.b32.xlu0 %v4812_v35, %s3573_s17  ;;  %2449 = vrot.lane.b32.xlu1 %v4824_v13, %s3573_s17 }
 0x6af   :  { %v4830_v36 = vpop.permute.xlu1 %2260  ;;  %v4832_v41 = vpop.permute.xlu0 %2323 }
 0x6b0   :  { %2413 = vrot.lane.b32.xlu0 %v4816_v22, %s3573_s17  ;;  %2443 = vrot.lane.b32.xlu1 %v4832_v41, %s3573_s17 }
 0x6b3   :  { %v4838_v10 = vpop.permute.xlu1 %2377  ;;  %v4840_v5 = vpop.permute.xlu0 %2314 }
 0x6b4   :  { %2407 = vrot.lane.b32.xlu0 %v4822_v39, %s3573_s17  ;;  %2437 = vrot.lane.b32.xlu1 %v4840_v5, %s3573_s17 }
 0x6b7   :  { %v4846_v0 = vpop.permute.xlu1 %2359  ;;  %v4848_v37 = vpop.permute.xlu0 %2305 }
 0x6b8   :  { %2401 = vrot.lane.b32.xlu0 %v4830_v36, %s3573_s17 }
 0x6bb   :  { %v4852_v49 = vpop.permute.xlu1 %2350  ;;  %v4854_v19 = vpop.permute.xlu0 %2296 }
 0x6bc   :  { %5240 = vst [vmem:[#allocation11_spill] sm:$0xff] %v4852_v49 }
 0x6bf   :  { %v4856_v12 = vpop.permute.xlu1 %2289  ;;  %v4858_v54 = vpop.permute.xlu0 %2386 }
 0x6c0   :  { %2421 = vrot.lane.b32.xlu1 %v4856_v12, %s3573_s17 }
 0x6c3   :  { %v4862_v50 = vpop.permute.xlu0 %2368  ;;  %v4870_v15 = vpop.permute.xlu1 %2280 }
 0x6c4   :  { %2431 = vrot.lane.b32.xlu1 %v4848_v37, %s3573_s17 }
 0x6c7   :  { %v4866_v16 = vpop.permute.xlu0 %2334  ;;  %v4878_v24 = vpop.permute.xlu1 %2271 }
 0x6c8   :  { %2451 = vrot.lane.b32.xlu0 %v4866_v16, %s3573_s17 }
 0x6cb   :  { %v4872_v4 = vpop.permute.xlu0 %2325  ;;  %v4890_v55 = vpop.permute.xlu1 %2262 }
 0x6cc   :  { %2415 = vrot.lane.b32.xlu0 %v4870_v15, %s3573_s17  ;;  %2445 = vrot.lane.b32.xlu1 %v4872_v4, %s3573_s17 }
 0x6cf   :  { %v4880_v52 = vpop.permute.xlu0 %2316  ;;  %v4901_v61 = vpop.permute.xlu1 %2298 }
 0x6d0   :  { %2399 = vrot.lane.b32.xlu0 %v4800_v26, %s3573_s17  ;;  %2439 = vrot.lane.b32.xlu1 %v4880_v52, %s3573_s17 }
 0x6d3   :  { %v4892_v57 = vpop.permute.xlu0 %2307  ;;  %v4911_v27 = vpop.permute.xlu1 %2388 }
 0x6d4   :  { %2409 = vrot.lane.b32.xlu0 %v4878_v24, %s3573_s17  ;;  %2429 = vrot.lane.b32.xlu1 %v4802_v17, %s3573_s17 }
 0x6d7   :  { %v4921_v60 = vpop.permute.xlu0 %2379  ;;  %v4927_v58 = vpop.permute.xlu1 %2370 }
 0x6d8   :  { %2403 = vrot.lane.b32.xlu0 %v4890_v55, %s3573_s17  ;;  %2433 = vrot.lane.b32.xlu1 %v4892_v57, %s3573_s17 }
 0x6db   :  { %v4937_v3 = vpop.permute.xlu0 %2361  ;;  %v4943_v56 = vpop.permute.xlu1 %2352 }
 0x6dc   :  { %2397 = vrot.lane.b32.xlu0 %v4732_v30, %s3573_s17  ;;  %2427 = vrot.lane.b32.xlu1 %v4901_v61, %s3573_s17  ;;  %5241 = vst [vmem:[#allocation6_spill] sm:$0xff] %v4943_v56 }
 0x6df   :  { %v4956_v46 = vpop.permute.xlu1 %2343 }
 0x6e0   :  { %2395 = vrot.lane.b32.xlu0 %v4702_v29, %s3573_s17  ;;  %2425 = vrot.lane.b32.xlu1 %v4854_v19, %s3573_s17  ;;  %5242 = vst [vmem:[#allocation12_spill] sm:$0xff] %v4956_v46 }
 0x6e4   :  { %2393 = vrot.lane.b32.xlu0 %v4672_v31, %s3573_s17  ;;  %2487 = vrot.lane.b32.xlu1 %v4911_v27, %s3573_s17 }
 0x6e8   :  { %2485 = vrot.lane.b32.xlu0 %v4858_v54, %s3573_s17  ;;  %2483 = vrot.lane.b32.xlu1 %v4804_v28, %s3573_s17 }
 0x6ec   :  { %2479 = vrot.lane.b32.xlu1 %v4838_v10, %s3573_s17  ;;  %2481 = vrot.lane.b32.xlu0 %v4921_v60, %s3573_s17 }
 0x6f0   :  { %2475 = vrot.lane.b32.xlu1 %v4927_v58, %s3573_s17  ;;  %2477 = vrot.lane.b32.xlu0 %v4806_v51, %s3573_s17 }
 0x6f4   :  { %2471 = vrot.lane.b32.xlu1 %v4808_v33, %s3573_s17  ;;  %2473 = vrot.lane.b32.xlu0 %v4862_v50, %s3573_s17 }
 0x6f8   :  { %2467 = vrot.lane.b32.xlu1 %v4846_v0, %s3573_s17  ;;  %2469 = vrot.lane.b32.xlu0 %v4937_v3, %s3573_s17 }
 0x6fa   :  { %v2424_v44 = vpop.permute.xlu0 %2423  ;;  %v2454_v45 = vpop.permute.xlu1 %2453 }
 0x6fc   :  { %2463 = vrot.lane.b32.xlu1 %v4943_v56, %s3573_s17  ;;  %2465 = vrot.lane.b32.xlu0 %v4810_v34, %s3573_s17 }
 0x6fe   :  { %v2418_v21 = vpop.permute.xlu0 %2417  ;;  %v2448_v6 = vpop.permute.xlu1 %2447 }
 0x700   :  { %2459 = vrot.lane.b32.xlu1 %v4814_v62, %s3573_s17  ;;  %2461 = vrot.lane.b32.xlu0 %v4852_v49, %s3573_s17 }
 0x702   :  { %v2412_v18 = vpop.permute.xlu0 %2411 }
 0x704   :  { %2646 = vperm.xlu1 %3375, %v2613_v40   ;;  %2457 = vrot.lane.b32.xlu0 %v4956_v46, %s3573_s17  ;;  %v2442_v40 = vpop.permute.xlu1 %2441 }
 0x706   :  { %v2406_v59 = vpop.permute.xlu0 %2405 }
 0x708   :  { %2636 = vperm.xlu1 %3375, %v2611_v32   ;;  %2641 = vperm.xlu0 %3374, %v2612_v48  }
 0x70c   :  { %2626 = vperm.xlu1 %3375, %v2609_v23   ;;  %2631 = vperm.xlu0 %3374, %v2610_v43   ;;  %v2553_v23 = vsel %vm2537_vm5, %v4768_v53, %v2424_v44  ;;  %v2568_v43 = vsel %vm2537_vm5, %v4770_v63, %v2454_v45 }
 0x710   :  { %2616 = vperm.xlu1 %3375, %v2607_v9   ;;  %2621 = vperm.xlu0 %3374, %v2608_v42   ;;  %v2436_v9 = vpop.permute.xlu1 %2435 }
 0x714   :  { %2867 = vperm.xlu1 %3375, %v2859_v38   ;;  %2862 = vperm.xlu0 %3374, %v2858_v2  }
 0x71a   :  { %v2456_v32 = vpop.permute.xlu0 %2455 }
 0x71b   :  { %v2569_v48 = vsel %vm2537_vm5, %v4818_v47, %v2456_v32 }
 0x71c   :  { %3186 = vmatprep.subr.mxu0 %v2569_v48 }
 0x71d   :  { %3187 = vmatpush3.msra.mxu0 %v2553_v23  ;;  %v2550_v23 = vsel %vm2537_vm5, %v4776_v14, %v2418_v21 }
 0x71e   :  { %3188 = vmatprep.subr.mxu0 %v2568_v43  ;;  %v2450_v42 = vpop.permute.xlu1 %2449  ;;  %v2420_v38 = vpop.permute.xlu0 %2419 }
 0x71f   :  { %v2551_v63 = vsel %vm2537_vm5, %v4812_v35, %v2420_v38  ;;  %v2566_v45 = vsel %vm2537_vm5, %v4824_v13, %v2450_v42 }
 0x722   :  { %v2444_v2 = vpop.permute.xlu1 %2443  ;;  %v2414_v46 = vpop.permute.xlu0 %2413 }
 0x723   :  { %v2548_v13 = vsel %vm2537_vm5, %v4816_v22, %v2414_v46  ;;  %v2563_v21 = vsel %vm2537_vm5, %v4832_v41, %v2444_v2 }
 0x726   :  { %v2438_v62 = vpop.permute.xlu1 %2437  ;;  %v2408_v49 = vpop.permute.xlu0 %2407 }
 0x727   :  { %v2545_v41 = vsel %vm2537_vm5, %v4822_v39, %v2408_v49 }
 0x72a   :  { %v2402_v32 = vpop.permute.xlu0 %2401 }
 0x732   :  { %v2422_v56 = vpop.permute.xlu1 %2421 }
 0x733   :  { %v2552_v47 = vsel %vm2537_vm5, %v4856_v12, %v2422_v56 }
 0x734   :  { %3189 = vmatpush3.msra.mxu0 %v2552_v47 }
 0x736   :  { %v2432_v53 = vpop.permute.xlu1 %2431 }
 0x73a   :  { %v2452_v44 = vpop.permute.xlu0 %2451 }
 0x73b   :  { %v2567_v48 = vsel %vm2537_vm5, %v4866_v16, %v2452_v44  ;;  %v2565_v16 = vsel %vm2537_vm5, %v4778_v25, %v2448_v6  ;;  %v2562_v25 = vsel %vm2537_vm5, %v4786_v11, %v2442_v40  ;;  %v2560_v11 = vsel %vm2537_vm5, %v4840_v5, %v2438_v62 }
 0x73c   :  { %3190 = vmatprep.subr.mxu0 %v2567_v48  ;;  %v2544_v40 = vsel %vm2537_vm5, %v4792_v8, %v2406_v59  ;;  %v2542_v62 = vsel %vm2537_vm5, %v4830_v36, %v2402_v32  ;;  %v2557_v8 = vsel %vm2537_vm5, %v4848_v37, %v2432_v53 }
 0x73d   :  { %3191 = vmatpush3.msra.mxu0 %v2551_v63 }
 0x73e   :  { %v2446_v43 = vpop.permute.xlu1 %2445  ;;  %3192 = vmatprep.subr.mxu0 %v2566_v45  ;;  %v2416_v12 = vpop.permute.xlu0 %2415 }
 0x73f   :  { %v2549_v56 = vsel %vm2537_vm5, %v4870_v15, %v2416_v12  ;;  %3193 = vmatpush3.msra.mxu0 %v2550_v23  ;;  %v2564_v35 = vsel %vm2537_vm5, %v4872_v4, %v2446_v43  ;;  %v2547_v15 = vsel %vm2537_vm5, %v4784_v20, %v2412_v18 }
 0x740   :  { %3194 = vmatprep.subr.mxu0 %v2565_v16 }
 0x741   :  { %3195 = vmatpush3.msra.mxu0 %v2549_v56 }
 0x742   :  { %v2440_v42 = vpop.permute.xlu1 %2439  ;;  %3196 = vmatprep.subr.mxu0 %v2564_v35  ;;  %v2400_v14 = vpop.permute.xlu0 %2399 }
 0x743   :  { %3197 = vmatpush3.msra.mxu0 %v2548_v13  ;;  %v2561_v46 = vsel %vm2537_vm5, %v4880_v52, %v2440_v42 }
 0x744   :  { %3198 = vmatprep.subr.mxu0 %v2563_v21 }
 0x745   :  { %3199 = vmatpush3.msra.mxu0 %v2547_v15 }
 0x746   :  { %v2430_v6 = vpop.permute.xlu1 %2429  ;;  %3200 = vmatprep.subr.mxu0 %v2562_v25  ;;  %v2410_v4 = vpop.permute.xlu0 %2409 }
 0x747   :  { %v2546_v22 = vsel %vm2537_vm5, %v4878_v24, %v2410_v4  ;;  %v2559_v24 = vsel %vm2537_vm5, %v4794_v1, %v2436_v9  ;;  %v2541_v1 = vsel %vm2537_vm5, %v4800_v26, %v2400_v14  ;;  %v2556_v59 = vsel %vm2537_vm5, %v4802_v17, %v2430_v6  ;;  %v2586_v17 = vld [vmem:[%s5196_s6] sm:$0xff] }
 0x748   :  { %3201 = vmatpush3.msra.mxu0 %v2546_v22 }
 0x749   :  { %3202 = vmatprep.subr.mxu0 %v2561_v46  ;;  %v5243_v46 = vld [vmem:[#allocation6_spill] sm:$0xff] }
 0x74a   :  { %v2434_v20 = vpop.permute.xlu1 %2433  ;;  %3203 = vmatpush3.msra.mxu0 %v2545_v41  ;;  %v2404_v18 = vpop.permute.xlu0 %2403 }
 0x74b   :  { %3204 = vmatprep.subr.mxu0 %v2560_v11  ;;  %v2543_v52 = vsel %vm2537_vm5, %v4890_v55, %v2404_v18  ;;  %v2558_v38 = vsel %vm2537_vm5, %v4892_v57, %v2434_v20  ;;  %v5244_v18 = vld [vmem:[#allocation11_spill] sm:$0xff] }
 0x74c   :  { %3205 = vmatpush3.msra.mxu0 %v2544_v40 }
 0x74d   :  { %3206 = vmatprep.subr.mxu0 %v2559_v24 }
 0x74e   :  { %v2428_v39 = vpop.permute.xlu1 %2427  ;;  %3207 = vmatpush3.msra.mxu0 %v2543_v52  ;;  %v2398_v49 = vpop.permute.xlu0 %2397  ;;  %v2588_v52 = vld [vmem:[%s5196_s6 + $0x10] sm:$0xff] }
 0x74f   :  { %3208 = vmatprep.subr.mxu0 %v2558_v38  ;;  %v2540_v57 = vsel %vm2537_vm5, %v4732_v30, %v2398_v49  ;;  %v2555_v36 = vsel %vm2537_vm5, %v4901_v61, %v2428_v39  ;;  %v2590_v61 = vld [vmem:[%s5196_s6 + $0x20] sm:$0xff]  ;;  %v5246_v39 = vld [vmem:[#allocation12_spill] sm:$0xff]  ;;  %v2591_v38 = vld [vmem:[%s5196_s6 + $0x28] sm:$0xff] }
 0x750   :  { %3209 = vmatpush3.msra.mxu0 %v2542_v62  ;;  %v2594_v62 = vld [vmem:[%s5196_s6 + $0x40] sm:$0xff] }
 0x751   :  { %3210 = vmatprep.subr.mxu0 %v2557_v8  ;;  %v2597_v8 = vld [vmem:[%s5196_s6 + $0x58] sm:$0xff] }
 0x752   :  { %v2426_v5 = vpop.permute.xlu1 %2425  ;;  %3211 = vmatpush3.msra.mxu0 %v2541_v1  ;;  %v2396_v55 = vpop.permute.xlu0 %2395  ;;  %v2600_v1 = vld [vmem:[%s5196_s6 + $0x70] sm:$0xff] }
 0x753   :  { %3212 = vmatprep.subr.mxu0 %v2556_v59  ;;  %v2539_v37 = vsel %vm2537_vm5, %v4702_v29, %v2396_v55  ;;  %v2554_v2 = vsel %vm2537_vm5, %v4854_v19, %v2426_v5  ;;  %v2603_v5 = vld [vmem:[%s5196_s6 + $0x88] sm:$0xff]  ;;  %v2606_v55 = vld [vmem:[%s5196_s6 + $0xa0] sm:$0x3] }
 0x754   :  { %3213 = vmatpush3.msra.mxu0 %v2540_v57  ;;  %v2856_v59 = vld [vmem:[%s5199_s8] sm:$0xff] }
 0x755   :  { %3214 = vmatprep.subr.mxu0 %v2555_v36 }
 0x756   :  { %v2488_v26 = vpop.permute.xlu1 %2487  ;;  %3215 = vmatpush3.msra.mxu0 %v2539_v37  ;;  %v2394_v9 = vpop.permute.xlu0 %2393 }
 0x757   :  { %v2538_v30 = vsel %vm2537_vm5, %v4672_v31, %v2394_v9  ;;  %3216 = vmatprep.subr.mxu0 %v2554_v2  ;;  %v2585_v29 = vsel %vm2537_vm5, %v4911_v27, %v2488_v26  ;;  %v2589_v31 = vld [vmem:[%s5196_s6 + $0x18] sm:$0xff] }
 0x758   :  { %3217 = vmatpush3.msra.mxu0 %v2538_v30  ;;  %v2593_v27 = vld [vmem:[%s5196_s6 + $0x38] sm:$0xff] }
 0x759   :  { %2714 = vmatmul.mubr.f32.vlgmr.msra.gmra.mxu0 %v2586_v17  ;;  %3282 = vmatprep.subr.mxu0 %v5227_v7 }
 0x75a   :  { %v2484_v19 = vpop.permute.xlu1 %2483  ;;  %3283 = vmatpush3.msra.mxu0 %v2585_v29  ;;  %v2486_v47 = vpop.permute.xlu0 %2485  ;;  %2718 = vmatprep.mubr.f32.mxu0 %v2590_v61 }
 0x75b   :  { %v2584_v32 = vsel %vm2537_vm5, %v4858_v54, %v2486_v47  ;;  %3284 = vmatprep.subr.mxu0 %v5227_v7  ;;  %v2583_v53 = vsel %vm2537_vm5, %v4804_v28, %v2484_v19  ;;  %v2592_v54 = vld [vmem:[%s5196_s6 + $0x30] sm:$0xff] }
 0x75c   :  { %3285 = vmatpush3.msra.mxu0 %v2584_v32  ;;  %v2596_v28 = vld [vmem:[%s5196_s6 + $0x50] sm:$0xff] }
 0x75d   :  { %2719 = vmatmul.mubr.f32.gmra.mxu0 %v2589_v31  ;;  %3286 = vmatprep.subr.mxu0 %v5227_v7 }
 0x75e   :  { %v2480_v44 = vpop.permute.xlu1 %2479  ;;  %3287 = vmatpush3.msra.mxu0 %v2583_v53  ;;  %v2482_v48 = vpop.permute.xlu0 %2481  ;;  %2723 = vmatprep.mubr.f32.mxu0 %v2593_v27 }
 0x75f   :  { %v2582_v63 = vsel %vm2537_vm5, %v4921_v60, %v2482_v48  ;;  %3288 = vmatprep.subr.mxu0 %v5227_v7  ;;  %v2581_v45 = vsel %vm2537_vm5, %v4838_v10, %v2480_v44  ;;  %v2595_v60 = vld [vmem:[%s5196_s6 + $0x48] sm:$0xff] }
 0x760   :  { %3289 = vmatpush3.msra.mxu0 %v2582_v63  ;;  %v2599_v10 = vld [vmem:[%s5196_s6 + $0x68] sm:$0xff] }
 0x761   :  { %2724 = vmatmul.mubr.f32.gmra.mxu0 %v2592_v54  ;;  %3290 = vmatprep.subr.mxu0 %v5227_v7 }
 0x762   :  { %v2476_v23 = vpop.permute.xlu1 %2475  ;;  %3291 = vmatpush3.msra.mxu0 %v2581_v45  ;;  %v2478_v43 = vpop.permute.xlu0 %2477  ;;  %2728 = vmatprep.mubr.f32.mxu0 %v2596_v28 }
 0x763   :  { %v2580_v12 = vsel %vm2537_vm5, %v4806_v51, %v2478_v43  ;;  %3292 = vmatprep.subr.mxu0 %v5227_v7  ;;  %v2579_v56 = vsel %vm2537_vm5, %v4927_v58, %v2476_v23  ;;  %v2598_v51 = vld [vmem:[%s5196_s6 + $0x60] sm:$0xff] }
 0x764   :  { %3293 = vmatpush3.msra.mxu0 %v2580_v12  ;;  %v2602_v58 = vld [vmem:[%s5196_s6 + $0x80] sm:$0xff] }
 0x765   :  { %2729 = vmatmul.mubr.f32.gmra.mxu0 %v2595_v60  ;;  %3294 = vmatprep.subr.mxu0 %v5227_v7 }
 0x766   :  { %v2472_v16 = vpop.permute.xlu1 %2471  ;;  %3295 = vmatpush3.msra.mxu0 %v2579_v56  ;;  %v2474_v35 = vpop.permute.xlu0 %2473  ;;  %2733 = vmatprep.mubr.f32.mxu0 %v2599_v10 }
 0x767   :  { %v2578_v13 = vsel %vm2537_vm5, %v4862_v50, %v2474_v35  ;;  %3296 = vmatprep.subr.mxu0 %v5227_v7  ;;  %v2577_v42 = vsel %vm2537_vm5, %v4808_v33, %v2472_v16  ;;  %v2601_v50 = vld [vmem:[%s5196_s6 + $0x78] sm:$0xff] }
 0x768   :  { %3297 = vmatpush3.msra.mxu0 %v2578_v13  ;;  %v2605_v33 = vld [vmem:[%s5196_s6 + $0x98] sm:$0x3] }
 0x769   :  { %2734 = vmatmul.mubr.f32.gmra.mxu0 %v2598_v51  ;;  %3298 = vmatprep.subr.mxu0 %v5227_v7 }
 0x76a   :  { %v2468_v14 = vpop.permute.xlu1 %2467  ;;  %3299 = vmatpush3.msra.mxu0 %v2577_v42  ;;  %v2470_v21 = vpop.permute.xlu0 %2469  ;;  %2738 = vmatprep.mubr.f32.mxu0 %v2602_v58 }
 0x76b   :  { %v2576_v15 = vsel %vm2537_vm5, %v4937_v3, %v2470_v21  ;;  %3300 = vmatprep.subr.mxu0 %v5227_v7  ;;  %v2575_v25 = vsel %vm2537_vm5, %v4846_v0, %v2468_v14  ;;  %v2604_v3 = vld [vmem:[%s5196_s6 + $0x90] sm:$0x3] }
 0x76c   :  { %3301 = vmatpush3.msra.mxu0 %v2576_v15 }
 0x76d   :  { %2739 = vmatmul.mubr.f32.gmra.mxu0 %v2601_v50  ;;  %3302 = vmatprep.subr.mxu0 %v5227_v7 }
 0x76e   :  { %v2464_v6 = vpop.permute.xlu1 %2463  ;;  %3303 = vmatpush3.msra.mxu0 %v2575_v25  ;;  %v2466_v4 = vpop.permute.xlu0 %2465  ;;  %2743 = vmatprep.mubr.f32.mxu0 %v2605_v33 }
 0x76f   :  { %v2574_v22 = vsel %vm2537_vm5, %v4810_v34, %v2466_v4  ;;  %3304 = vmatprep.subr.mxu0 %v5227_v7  ;;  %v2573_v0 = vsel %vm2537_vm5, %v5243_v46, %v2464_v6  ;;  %v5245_v34 = vld [vmem:[#allocation3_spill] sm:$0xff] }
 0x770   :  { %3305 = vmatpush3.msra.mxu0 %v2574_v22 }
 0x771   :  { %2744 = vmatmul.mubr.f32.gmra.mxu0 %v2604_v3  ;;  %3306 = vmatprep.subr.mxu0 %v5227_v7 }
 0x772   :  { %v2460_v41 = vpop.permute.xlu1 %2459  ;;  %3307 = vmatpush3.msra.mxu0 %v2573_v0  ;;  %v2462_v20 = vpop.permute.xlu0 %2461  ;;  %3314 = vmatprep.mubr.msk.f32.mxu0 %vm3574_vm6, %v5227_v7 }
 0x773   :  { %v2572_v11 = vsel %vm2537_vm5, %v5244_v18, %v2462_v20  ;;  %3308 = vmatprep.subr.mxu0 %v5227_v7  ;;  %v2571_v40 = vsel %vm2537_vm5, %v5245_v34, %v2460_v41 }
 0x774   :  { %3309 = vmatpush3.msra.mxu0 %v2572_v11 }
 0x775   :  { %3310 = vmatprep.subr.mxu0 %v5227_v7 }
 0x776   :  { %3311 = vmatpush3.msra.mxu0 %v2571_v40  ;;  %v2458_v24 = vpop.permute.xlu0 %2457 }
 0x777   :  { %v2570_v49 = vsel %vm2537_vm5, %v5246_v39, %v2458_v24  ;;  %3312 = vmatprep.subr.mxu0 %v5227_v7 }
 0x778   :  { %3313 = vmatpush3.msra.mxu0 %v2570_v49 }
 0x779   :  { %3315 = vmatmul.mubr.f32.vlgmr.msra.gmra.mxu0 %v2588_v52 }
 0x77a   :  { %3317 = vmatprep.mubr.msk.f32.mxu0 %vm3574_vm6, %v5227_v7 }
 0x77d   :  { %3318 = vmatmul.mubr.f32.gmra.mxu0 %v2591_v38 }
 0x77e   :  { %3320 = vmatprep.mubr.msk.f32.mxu0 %vm3574_vm6, %v5227_v7 }
 0x77f   :  { %v2647_v28 = vpop.permute.xlu1 %2646 }
 0x781   :  { %3321 = vmatmul.mubr.f32.gmra.mxu0 %v2594_v62 }
 0x782   :  { %3323 = vmatprep.mubr.msk.f32.mxu0 %vm3574_vm6, %v5227_v7 }
 0x783   :  { %v2642_v43 = vpop.permute.xlu0 %2641  ;;  %v2637_v56 = vpop.permute.xlu1 %2636 }
 0x785   :  { %3324 = vmatmul.mubr.f32.gmra.mxu0 %v2597_v8 }
 0x786   :  { %3326 = vmatprep.mubr.msk.f32.mxu0 %vm3574_vm6, %v5227_v7 }
 0x787   :  { %v2632_v14 = vpop.permute.xlu0 %2631  ;;  %v2627_v6 = vpop.permute.xlu1 %2626 }
 0x789   :  { %3327 = vmatmul.mubr.f32.gmra.mxu0 %v2600_v1 }
 0x78a   :  { %3329 = vmatprep.mubr.msk.f32.mxu0 %vm3574_vm6, %v5227_v7 }
 0x78b   :  { %v2622_v34 = vpop.permute.xlu0 %2621  ;;  %v2617_v39 = vpop.permute.xlu1 %2616 }
 0x78d   :  { %3330 = vmatmul.mubr.f32.gmra.mxu0 %v2603_v5 }
 0x78e   :  { %3332 = vmatprep.mubr.msk.f32.mxu0 %vm3574_vm6, %v5227_v7 }
 0x791   :  { %3333 = vmatmul.mubr.f32.gmra.mxu0 %v2606_v55 }
 0x792   :  { %3349 = vmatprep.mubr.msk.f32.mxu0 %vm2870_vm7, %v2856_v59  ;;  %v2857_v59 = vld [vmem:[%s5199_s8 + $0x8] sm:$0x3] }
 0x819   :  { %v3218_v57 = vpop.f32.mrf.mxu0 }
 0x81b   :  { %v3219_v36 = vpop.f32.mrf.mxu0 }
 0x81c   :  { %v3220_v41 = vadd.f32 %v3219_v36, %v3218_v57  ;;  %v2868_v57 = vpop.permute.xlu1 %2867 }
 0x81d   :  { %v3221_v37 = vpop.f32.mrf.mxu0 }
 0x81e   :  { %v2716_v49 = vadd.f32 %v3220_v41, %v2617_v39 }
 0x81f   :  { %v3222_v26 = vpop.f32.mrf.mxu0 }
 0x820   :  { %v3223_v3 = vadd.f32 %v3222_v26, %v3221_v37  ;;  %v2863_v26 = vpop.permute.xlu0 %2862 }
 0x821   :  { %v3224_v9 = vpop.f32.mrf.mxu0 }
 0x822   :  { %v2721_v40 = vadd.f32 %v3223_v3, %v2622_v34 }
 0x823   :  { %v3225_v2 = vpop.f32.mrf.mxu0 }
 0x824   :  { %v3226_v50 = vadd.f32 %v3225_v2, %v3224_v9 }
 0x825   :  { %v3227_v17 = vpop.f32.mrf.mxu0 }
 0x826   :  { %v2726_v20 = vadd.f32 %v3226_v50, %v2627_v6 }
 0x827   :  { %v3228_v7 = vpop.f32.mrf.mxu0 }
 0x828   :  { %v3229_v13 = vadd.f32 %v3228_v7, %v3227_v17 }
 0x829   :  { %v3230_v30 = vpop.f32.mrf.mxu0 }
 0x82a   :  { %v2731_v22 = vadd.f32 %v3229_v13, %v2632_v14 }
 0x82b   :  { %v3231_v61 = vpop.f32.mrf.mxu0 }
 0x82c   :  { %v3232_v35 = vadd.f32 %v3231_v61, %v3230_v30 }
 0x82d   :  { %v3233_v29 = vpop.f32.mrf.mxu0 }
 0x82e   :  { %v2736_v15 = vadd.f32 %v3232_v35, %v2637_v56 }
 0x82f   :  { %v3234_v19 = vpop.f32.mrf.mxu0 }
 0x830   :  { %v3235_v12 = vadd.f32 %v3234_v19, %v3233_v29 }
 0x831   :  { %v3236_v47 = vpop.f32.mrf.mxu0 }
 0x832   :  { %v2741_v58 = vadd.f32 %v3235_v12, %v2642_v43 }
 0x833   :  { %v3237_v31 = vpop.f32.mrf.mxu0 }
 0x834   :  { %v3238_v10 = vadd.f32 %v3237_v31, %v3236_v47 }
 0x836   :  { %v2746_v42 = vadd.f32 %v3238_v10, %v2647_v28 }
 0x839   :  { %v2815_v32 = vpop.f32.mrf.mxu0 }
 0x83a   :  { %v2816_v8 = vadd.f32 %v2815_v32, %v2716_v49 }
 0x83b   :  { %v3316_v27 = vpop.f32.mrf.mxu0 }
 0x83c   :  { %v2849_v55 = vmax.f32 %v2816_v8, 0.0 }
 0x83d   :  { %v2820_v53 = vpop.f32.mrf.mxu0 }
 0x83e   :  { %v2821_v38 = vadd.f32 %v2820_v53, %v2721_v40 }
 0x83f   :  { %v3319_v44 = vpop.f32.mrf.mxu0 }
 0x840   :  { %v2850_v5 = vmax.f32 %v2821_v38, 0.0 }
 0x841   :  { %v2825_v48 = vpop.f32.mrf.mxu0 }
 0x842   :  { %v2826_v24 = vadd.f32 %v2825_v48, %v2726_v20 }
 0x843   :  { %v3322_v54 = vpop.f32.mrf.mxu0 }
 0x844   :  { %v2851_v1 = vmax.f32 %v2826_v24, 0.0 }
 0x845   :  { %v2830_v63 = vpop.f32.mrf.mxu0 }
 0x846   :  { %v2831_v18 = vadd.f32 %v2830_v63, %v2731_v22 }
 0x847   :  { %v3325_v45 = vpop.f32.mrf.mxu0 }
 0x848   :  { %v2852_v62 = vmax.f32 %v2831_v18, 0.0 }
 0x849   :  { %v2835_v23 = vpop.f32.mrf.mxu0 }
 0x84a   :  { %v2836_v46 = vadd.f32 %v2835_v23, %v2736_v15 }
 0x84b   :  { %v3328_v60 = vpop.f32.mrf.mxu0 }
 0x84c   :  { %v2853_v52 = vmax.f32 %v2836_v46, 0.0 }
 0x84d   :  { %v2840_v16 = vpop.f32.mrf.mxu0 }
 0x84e   :  { %v2841_v33 = vadd.f32 %v2840_v16, %v2741_v58 }
 0x84f   :  { %v3331_v51 = vpop.f32.mrf.mxu0 }
 0x850   :  { %v2854_v11 = vmax.f32 %v2841_v33, 0.0 }
 0x851   :  { %v2845_v21 = vpop.f32.mrf.mxu0 }
 0x852   :  { %v2846_v25 = vadd.f32 %v2845_v21, %v2746_v42 }
 0x853   :  { %v3334_v4 = vpop.f32.mrf.mxu0 }
 0x854   :  { %v2855_v0 = vmax.f32 %v2846_v25, 0.0 }
 0x856   :  { %3335 = vmatprep.subr.msk.mxu0 %vm2877_vm8, %v2855_v0 }
 0x857   :  { %3336 = vmatpush3.msk.msra.mxu0 %vm2877_vm8, %v2855_v0 }
 0x858   :  { %3337 = vmatprep.subr.mxu0 %v2854_v11 }
 0x859   :  { %3338 = vmatpush3.msra.mxu0 %v2854_v11 }
 0x85a   :  { %3339 = vmatprep.subr.mxu0 %v2853_v52 }
 0x85b   :  { %3340 = vmatpush3.msra.mxu0 %v2853_v52 }
 0x85c   :  { %3341 = vmatprep.subr.mxu0 %v2852_v62 }
 0x85d   :  { %3342 = vmatpush3.msra.mxu0 %v2852_v62 }
 0x85e   :  { %3343 = vmatprep.subr.mxu0 %v2851_v1 }
 0x85f   :  { %3344 = vmatpush3.msra.mxu0 %v2851_v1 }
 0x860   :  { %3345 = vmatprep.subr.mxu0 %v2850_v5 }
 0x861   :  { %3346 = vmatpush3.msra.mxu0 %v2850_v5 }
 0x862   :  { %3347 = vmatprep.subr.mxu0 %v2849_v55 }
 0x863   :  { %3348 = vmatpush3.msra.mxu0 %v2849_v55 }
 0x864   :  { %3350 = vmatmul.mubr.msk.f32.vlgmr.msra.gmra.mxu0 %vm2870_vm7, %v2857_v59 }
 0x924   :  { %v3351_v36 = vpop.f32.mrf.mxu0 }
 0x925   :  { %v2953_v37 = vadd.f32 %v3351_v36, %v2868_v57 }
 0x926   :  { %v2947_v9 = vpop.f32.mrf.mxu0 }
 0x927   :  { %v2948_v2 = vadd.f32 %v2947_v9, %v2863_v26  ;;  %v2959_v17 = vsel %vm2958_vm9, %v2953_v37, -inf }
 0x929   :  { %v2957_v7 = vsel %vm2956_vm10, %v2948_v2, -inf }
 0x92a   :  { %v2960_v30 = vmax.f32 %v2957_v7, %v2959_v17 }
 0x92c   :  { %v2961_v61 = vrot.slane %v2960_v30, 4 }
 0x92e   :  { %v2962_v29 = vmax.f32 %v2960_v30, %v2961_v61 }
 0x930   :  { %v2963_v19 = vrot.slane %v2962_v29, 2 }
 0x932   :  { %v2964_v47 = vmax.f32 %v2962_v29, %v2963_v19 }
 0x934   :  { %v2965_v31 = vrot.slane %v2964_v47, 1 }
 0x936   :  { %v2966_v32 = vmax.f32 %v2964_v47, %v2965_v31 }
 0x938   :  { %v2967_v27 = vsub.f32 %v2948_v2, %v2966_v32  ;;  %v2968_v53 = vsub.f32 %v2953_v37, %v2966_v32 }
 0x93a   :  { %v2969_v44 = vmul.f32 1.442695, %v2967_v27  ;;  %v2971_v48 = vmul.f32 1.442695, %v2968_v53 }
 0x93c   :  { %3547 = vpow2.f32 %v2969_v44 }
 0x93d   :  { %3549 = vpow2.f32 %v2971_v48 }
 0x949   :  { %v3548_v54 = vpop.eup %3547 }
 0x94a   :  { %v3550_v63 = vpop.eup %3549  ;;  %v2973_v28 = vsel %vm2956_vm10, %v3548_v54, 0.0 }
 0x94b   :  { %v2974_v45 = vsel %vm2958_vm9, %v3550_v63, 0.0 }
 0x94c   :  { %v2975_v23 = vadd.f32 %v2974_v45, %v2973_v28 }
 0x94e   :  { %v2976_v43 = vrot.slane %v2975_v23, 4 }
 0x950   :  { %v2977_v60 = vadd.f32 %v2976_v43, %v2975_v23 }
 0x952   :  { %v2978_v12 = vrot.slane %v2977_v60, 2 }
 0x954   :  { %v2979_v10 = vadd.f32 %v2978_v12, %v2977_v60 }
 0x956   :  { %v2980_v56 = vrot.slane %v2979_v10, 1 }
 0x958   :  { %v2981_v16 = vadd.f32 %v2980_v56, %v2979_v10 }
 0x95a   :  { %3551 = vlog2.f32 %v2981_v16 }
 0x967   :  { %v3552_v35 = vpop.eup %3551 }
 0x968   :  { %v2983_v51 = vmul.f32 0.6931472, %v3552_v35 }
 0x96a   :  { %v2984_v13 = vsub.f32 %v2967_v27, %v2983_v51  ;;  %v2985_v58 = vsub.f32 %v2968_v53, %v2983_v51 }
 0x96c   :  { %2986 = vst.msk [vmem:[%s5200_s10] sm:$0xff] %vm2956_vm10, %v2984_v13 }
 0x96d   :  { %2987 = vst.msk [vmem:[%s5200_s10 + $0x8] sm:$0x3] %vm2958_vm9, %v2985_v58 }

</bundles_post_ra>
